<compile_context>
chip_gen: v6e
topology: v6e:2x2x1
jax: 0.10.0
libtpu: 0.0.40
codegen_flags: <defaults>
</compile_context>

<pallas_src>
import functools
import math

import jax
import jax.numpy as jnp
from jax.experimental import pallas as pl
from jax.experimental.pallas import tpu as pltpu

LANE = 128  # TPU lane width; feature dims are padded to a multiple of this.

_ACTIVATIONS = {
    "relu": lambda y: jnp.maximum(y, 0.0),
    "tanh": jnp.tanh,
    "sigmoid": jax.nn.sigmoid,
    "gelu": jax.nn.gelu,
    "silu": jax.nn.silu,
    None: lambda y: y,
}
# TODO(synk): activation strings outside _ACTIVATIONS (module uses getattr(F, name)).


def _pad_to(n: int, m: int) -> int:
    return ((n + m - 1) // m) * m


# --------------------------------------------------------------------------- #
# Kernel
# --------------------------------------------------------------------------- #
def _fused_mlp_kernel(x_ref, *refs, n_layers: int, compute_dtype, act_fn):
    """Fused (Linear -> act)* Linear on one batch tile.

    refs = (w_0, b_0, w_1, b_1, ..., w_{L-1}, b_{L-1}, o_ref)
    Weights are compute_dtype [Din_pad, Dout_pad]; biases f32 [1, Dout_pad].
    Layer loop is a static Python unroll; per-layer live f32 tiles stay small
    (tile_n x max(pdims) x 4B) so nothing spills out of the vreg file.
    """
    o_ref = refs[2 * n_layers]
    h = x_ref[...].astype(compute_dtype)              # cast in-kernel (no wrapper pass)
    for i in range(n_layers):
        w_ref = refs[2 * i]
        b_ref = refs[2 * i + 1]
        # MXU matmul with f32 accumulation; bias add in f32.
        y = jnp.dot(h, w_ref[...], preferred_element_type=jnp.float32) + b_ref[...]
        if i < n_layers - 1:
            h = act_fn(y).astype(compute_dtype)        # back to bf16 for the next MXU pass
        else:
            h = y
    o_ref[...] = h.astype(o_ref.dtype)


# --------------------------------------------------------------------------- #
# Parameter init (matches reset_parameters: xavier_uniform weights, zero bias)
# --------------------------------------------------------------------------- #
def init_mlp_params(key, input_dim, hidden_dims):
    """PyTorch stores weight as [out, in]; we store the transpose [in, out]."""
    dims = [input_dim] + list(hidden_dims)
    params = []
    for i in range(len(dims) - 1):
        key, sub = jax.random.split(key)
        fan_in, fan_out = dims[i], dims[i + 1]
        limit = math.sqrt(6.0 / (fan_in + fan_out))
        w = jax.random.uniform(
            sub, (fan_in, fan_out), dtype=jnp.float32, minval=-limit, maxval=limit
        )
        b = jnp.zeros((fan_out,), dtype=jnp.float32)
        params.append((w, b))
    return params


# --------------------------------------------------------------------------- #
# Tile-size / VMEM budgeting
# --------------------------------------------------------------------------- #
def _choose_tile_n(N, pdims, in_itemsize, out_itemsize, comp_itemsize, max_tile):
    n_layers = len(pdims) - 1
    # Resident (single-buffered) parameters.
    resident = (
        sum(pdims[i] * pdims[i + 1] for i in range(n_layers)) * comp_itemsize
        + sum(pdims[1:]) * 4
    )
    # Per-row VMEM: double-buffered x tile + double-buffered out tile + f32 headroom.
    per_row = 2 * pdims[0] * in_itemsize + 2 * pdims[-1] * out_itemsize + 2 * max(pdims) * 4
    # Conservative budget so the plan also fits v7x's 64 MiB per-core VMEM.
    budget = (48 << 20) - resident
    cap = max(8, (budget // per_row) // 8 * 8) if budget > 8 * per_row else 8

    n_pad8 = _pad_to(max(N, 1), 8)
    tile = min(max_tile, cap, n_pad8)
    if n_pad8 >= 16:
        # Keep grid length >= 2 so ("parallel",) can shard batch tiles across
        # both TensorCores on v7x (also minimizes padding waste for small N).
        tile = min(tile, _pad_to((N + 1) // 2, 8))
    return max(8, tile)


def _resident_spec(shape, single_buffer):
    """Grid-invariant (VMEM-resident) BlockSpec; optionally single-buffered."""
    index_map = lambda i: (0,) * len(shape)
    if single_buffer:
        return pl.BlockSpec(shape, index_map, pipeline_mode=pl.Buffered(1))
    return pl.BlockSpec(shape, index_map)


# --------------------------------------------------------------------------- #
# Forward wrapper
# --------------------------------------------------------------------------- #
def mlp_forward(
    x,
    params,
    *,
    tile_n=None,
    max_tile_n=512,
    param_dtype=jnp.bfloat16,
    out_dtype=None,
    activation="relu",
):
    """Fused MLP forward.  x: [N, input_dim] -> [N, hidden_dims[-1]]."""
    N, Din = x.shape
    n_layers = len(params)
    dims = [Din] + [w.shape[1] for w, _ in params]
    pdims = [_pad_to(d, LANE) for d in dims]          # lane-dense feature widths
    out_dtype = x.dtype if out_dtype is None else out_dtype
    act_fn = _ACTIVATIONS[activation]

    comp_item = jnp.dtype(param_dtype).itemsize
    in_item = max(jnp.dtype(x.dtype).itemsize, comp_item)
    out_item = jnp.dtype(out_dtype).itemsize

    # ---- pad & cast parameters once (zero padding keeps the math exact) ----
    # TODO(synk): for hidden widths that don't fit VMEM-resident weights
    # (>= ~2-3k on v7x), stream weight tiles over a reduction grid axis instead.
    flat_params = []
    for li, (w, b) in enumerate(params):
        wp = (
            jnp.zeros((pdims[li], pdims[li + 1]), param_dtype)
            .at[: w.shape[0], : w.shape[1]]
            .set(w.astype(param_dtype))
        )
        bp = (
            jnp.zeros((1, pdims[li + 1]), jnp.float32)
            .at[:, : b.shape[-1]]
            .set(b.reshape(1, -1).astype(jnp.float32))
        )
        flat_params += [wp, bp]

    # ---- batch tile (large, VMEM-budgeted, grid>=2 where possible) ----------
    if tile_n is None:
        tile_n = _choose_tile_n(N, pdims, in_item, out_item, comp_item, max_tile_n)
    tile_n = max(8, _pad_to(tile_n, 8))
    Np = _pad_to(max(N, tile_n), tile_n)

    # ---- input: pad/cast ONLY if geometry requires it; else pass through ----
    need_pad_in = (Np != N) or (pdims[0] != Din)
    if need_pad_in:
        xp = (
            jnp.zeros((Np, pdims[0]), param_dtype)
            .at[:N, :Din]
            .set(x.astype(param_dtype))
        )
    else:
        xp = x  # dtype cast happens inside the kernel; no extra HBM pass

    grid = (Np // tile_n,)

    flops = 2 * Np * sum(pdims[i] * pdims[i + 1] for i in range(n_layers))
    bytes_accessed = int(
        xp.size * xp.dtype.itemsize
        + sum(p.size * p.dtype.itemsize for p in flat_params)
        + Np * pdims[-1] * jnp.dtype(out_dtype).itemsize
    )
    cost = pl.CostEstimate(flops=flops, transcendentals=0, bytes_accessed=bytes_accessed)

    kernel = functools.partial(
        _fused_mlp_kernel,
        n_layers=n_layers,
        compute_dtype=param_dtype,
        act_fn=act_fn,
    )

    def _call(single_buffer):
        in_specs = [pl.BlockSpec((tile_n, pdims[0]), lambda i: (i, 0))]
        for li in range(n_layers):
            in_specs.append(_resident_spec((pdims[li], pdims[li + 1]), single_buffer))
            in_specs.append(_resident_spec((1, pdims[li + 1]), single_buffer))
        out_specs = pl.BlockSpec((tile_n, pdims[-1]), lambda i: (i, 0))

        # Explicit VMEM budget -> raise the scoped limit accordingly (capped at
        # 64 MiB so it is valid on every generation).
        wbuf = 1 if single_buffer else 2
        need = (
            wbuf * sum(pdims[i] * pdims[i + 1] for i in range(n_layers)) * comp_item
            + wbuf * sum(pdims[1:]) * 4
            + 2 * tile_n * pdims[0] * jnp.dtype(xp.dtype).itemsize
            + 2 * tile_n * pdims[-1] * out_item
            + 2 * tile_n * max(pdims) * 4
        )
        vmem_limit = int(min(64 << 20, max(32 << 20, need * 5 // 4)))

        return pl.pallas_call(
            kernel,
            out_shape=jax.ShapeDtypeStruct((Np, pdims[-1]), out_dtype),
            grid=grid,
            in_specs=in_specs,
            out_specs=out_specs,
            compiler_params=pltpu.CompilerParams(
                # Batch tiles are independent -> v7x shards across its 2 TCs;
                # also enables double-buffered pipelining of the x/out tiles.
                dimension_semantics=("parallel",),
                vmem_limit_bytes=vmem_limit,
            ),
            cost_estimate=cost,
        )(xp, *flat_params)

    try:
        # Preferred: weights/biases single-buffered (they are grid-invariant,
        # so double-buffering them is pure VMEM waste).
        out_padded = _call(single_buffer=True)
    except Exception:
        # Fallback for Pallas versions that reject Buffered(1): default buffering.
        out_padded = _call(single_buffer=False)

    # Slice padding back off only if padding was introduced.
    if (Np != N) or (pdims[-1] != dims[-1]):
        return out_padded[:N, : dims[-1]]
    return out_padded
    # TODO(synk): dropout>0 path not implemented (default dropout=0 -> identity).


# --------------------------------------------------------------------------- #
# Reference with numerics identical to the kernel (bf16 operands, f32 accum)
# --------------------------------------------------------------------------- #
def _ref_forward(x, params, param_dtype=jnp.bfloat16, activation="relu", out_dtype=None):
    act = _ACTIVATIONS[activation]
    out_dtype = x.dtype if out_dtype is None else out_dtype
    h = x.astype(param_dtype)
    for i, (w, b) in enumerate(params):
        y = jnp.dot(h, w.astype(param_dtype), preferred_element_type=jnp.float32)
        y = y + b.reshape(1, -1).astype(jnp.float32)
        if i < len(params) - 1:
            h = act(y).astype(param_dtype)
        else:
            h = y
    return h.astype(out_dtype)


if __name__ == "__main__":
    key = jax.random.PRNGKey(0)
    key, xkey, x2key = jax.random.split(key, 3)

    # Case 1: non-aligned batch & features -> exercises padding + grid=(2,).
    batch, input_dim, hidden_dims = 200, 32, [64, 32, 16]
    x = jax.random.normal(xkey, (batch, input_dim), dtype=jnp.float32)
    params = init_mlp_params(key, input_dim, hidden_dims)

    out = mlp_forward(x, params)
    jax.block_until_ready(out)
    assert out.shape == (batch, hidden_dims[-1])
    ref = _ref_forward(x, params)
    assert jnp.allclose(out, ref, atol=1e-3, rtol=1e-3), float(jnp.max(jnp.abs(out - ref)))

    # Case 2: already tile/lane aligned -> exercises the no-pad pass-through path.
    key2 = jax.random.PRNGKey(0)
    x2 = jax.random.normal(x2key, (256, 128), dtype=jnp.float32)
    params2 = init_mlp_params(key2, 128, [128, 128])
    out2 = mlp_forward(x2, params2)
    jax.block_until_ready(out2)
    assert out2.shape == (256, 128)
    ref2 = _ref_forward(x2, params2)
    assert jnp.allclose(out2, ref2, atol=1e-2, rtol=1e-2), float(jnp.max(jnp.abs(out2 - ref2)))

    print("KERNEL_OK")
</pallas_src>

<mosaic_0001>
module attributes {stable_mosaic.version = 11 : i64} {
  func.func @_fused_mlp_kernel(%arg0: i32, %arg1: memref<104x128xbf16, #tpu.memory_space<vmem>>, %arg2: memref<128x128xbf16, #tpu.memory_space<vmem>>, %arg3: memref<1x128xf32, #tpu.memory_space<vmem>>, %arg4: memref<128x128xbf16, #tpu.memory_space<vmem>>, %arg5: memref<1x128xf32, #tpu.memory_space<vmem>>, %arg6: memref<128x128xbf16, #tpu.memory_space<vmem>>, %arg7: memref<1x128xf32, #tpu.memory_space<vmem>>, %arg8: memref<104x128xf32, #tpu.memory_space<vmem>>) attributes {dimension_semantics = [#tpu.dimension_semantics<parallel>], iteration_bounds = array<i64: 2>, scalar_prefetch = 0 : i64, scratch_operands = 0 : i64, tpu.core_type = #tpu.core_type<tc>, window_params = [{transform_indices = @transform_0, window_bounds = array<i64: 104, 128>}, {pipeline_mode = #tpu.pipeline_mode<synchronous>, transform_indices = @transform_1, window_bounds = array<i64: 128, 128>}, {pipeline_mode = #tpu.pipeline_mode<synchronous>, transform_indices = @transform_2, window_bounds = array<i64: 1, 128>}, {pipeline_mode = #tpu.pipeline_mode<synchronous>, transform_indices = @transform_3, window_bounds = array<i64: 128, 128>}, {pipeline_mode = #tpu.pipeline_mode<synchronous>, transform_indices = @transform_4, window_bounds = array<i64: 1, 128>}, {pipeline_mode = #tpu.pipeline_mode<synchronous>, transform_indices = @transform_5, window_bounds = array<i64: 128, 128>}, {pipeline_mode = #tpu.pipeline_mode<synchronous>, transform_indices = @transform_6, window_bounds = array<i64: 1, 128>}, {transform_indices = @transform_7, window_bounds = array<i64: 104, 128>}]} {
    %c0 = arith.constant 0 : index
    %c0_0 = arith.constant 0 : index
    %0 = vector.load %arg1[%c0, %c0_0] : memref<104x128xbf16, #tpu.memory_space<vmem>>, vector<104x128xbf16>
    %c0_1 = arith.constant 0 : index
    %c0_2 = arith.constant 0 : index
    %1 = vector.load %arg2[%c0_1, %c0_2] : memref<128x128xbf16, #tpu.memory_space<vmem>>, vector<128x128xbf16>
    %cst = arith.constant dense<0.000000e+00> : vector<104x128xf32>
    %2 = tpu.matmul %0, %1, %cst {dimension_numbers = #tpu.dot_dimension_numbers<[1], [0], [0], [1], [0, 0, 1, 1], [], []>} : vector<104x128xbf16>, vector<128x128xbf16>, vector<104x128xf32> -> vector<104x128xf32>
    %c0_3 = arith.constant 0 : index
    %c0_4 = arith.constant 0 : index
    %3 = vector.load %arg3[%c0_3, %c0_4] : memref<1x128xf32, #tpu.memory_space<vmem>>, vector<1x128xf32>
    %4 = vector.broadcast %3 : vector<1x128xf32> to vector<104x128xf32>
    %5 = arith.addf %2, %4 : vector<104x128xf32>
    %cst_5 = arith.constant 0.000000e+00 : f32
    %6 = vector.broadcast %cst_5 : f32 to vector<104x128xf32>
    %7 = arith.maximumf %5, %6 : vector<104x128xf32>
    %8 = arith.truncf %7 : vector<104x128xf32> to vector<104x128xbf16>
    %c0_6 = arith.constant 0 : index
    %c0_7 = arith.constant 0 : index
    %9 = vector.load %arg4[%c0_6, %c0_7] : memref<128x128xbf16, #tpu.memory_space<vmem>>, vector<128x128xbf16>
    %cst_8 = arith.constant dense<0.000000e+00> : vector<104x128xf32>
    %10 = tpu.matmul %8, %9, %cst_8 {dimension_numbers = #tpu.dot_dimension_numbers<[1], [0], [0], [1], [0, 0, 1, 1], [], []>} : vector<104x128xbf16>, vector<128x128xbf16>, vector<104x128xf32> -> vector<104x128xf32>
    %c0_9 = arith.constant 0 : index
    %c0_10 = arith.constant 0 : index
    %11 = vector.load %arg5[%c0_9, %c0_10] : memref<1x128xf32, #tpu.memory_space<vmem>>, vector<1x128xf32>
    %12 = vector.broadcast %11 : vector<1x128xf32> to vector<104x128xf32>
    %13 = arith.addf %10, %12 : vector<104x128xf32>
    %cst_11 = arith.constant 0.000000e+00 : f32
    %14 = vector.broadcast %cst_11 : f32 to vector<104x128xf32>
    %15 = arith.maximumf %13, %14 : vector<104x128xf32>
    %16 = arith.truncf %15 : vector<104x128xf32> to vector<104x128xbf16>
    %c0_12 = arith.constant 0 : index
    %c0_13 = arith.constant 0 : index
    %17 = vector.load %arg6[%c0_12, %c0_13] : memref<128x128xbf16, #tpu.memory_space<vmem>>, vector<128x128xbf16>
    %cst_14 = arith.constant dense<0.000000e+00> : vector<104x128xf32>
    %18 = tpu.matmul %16, %17, %cst_14 {dimension_numbers = #tpu.dot_dimension_numbers<[1], [0], [0], [1], [0, 0, 1, 1], [], []>} : vector<104x128xbf16>, vector<128x128xbf16>, vector<104x128xf32> -> vector<104x128xf32>
    %c0_15 = arith.constant 0 : index
    %c0_16 = arith.constant 0 : index
    %19 = vector.load %arg7[%c0_15, %c0_16] : memref<1x128xf32, #tpu.memory_space<vmem>>, vector<1x128xf32>
    %20 = vector.broadcast %19 : vector<1x128xf32> to vector<104x128xf32>
    %21 = arith.addf %18, %20 : vector<104x128xf32>
    %c0_17 = arith.constant 0 : index
    %c0_18 = arith.constant 0 : index
    %22 = vector.load %arg8[%c0_17, %c0_18] : memref<104x128xf32, #tpu.memory_space<vmem>>, vector<104x128xf32>
    tpu.vector_store %arg8[%c0_17, %c0_18], %21 {strides = array<i32>} : memref<104x128xf32, #tpu.memory_space<vmem>>, vector<104x128xf32>,
    return
  }
  func.func @transform_0(%arg0: i32) -> (i32, i32) {
    %c0_i32 = arith.constant 0 : i32
    %c0_i32_0 = arith.constant 0 : i32
    return %arg0, %c0_i32 : i32, i32
  }
  func.func @transform_1(%arg0: i32) -> (i32, i32) {
    %c0_i32 = arith.constant 0 : i32
    %c0_i32_0 = arith.constant 0 : i32
    %c0_i32_1 = arith.constant 0 : i32
    return %c0_i32, %c0_i32_0 : i32, i32
  }
  func.func @transform_2(%arg0: i32) -> (i32, i32) {
    %c0_i32 = arith.constant 0 : i32
    %c0_i32_0 = arith.constant 0 : i32
    %c0_i32_1 = arith.constant 0 : i32
    return %c0_i32, %c0_i32_0 : i32, i32
  }
  func.func @transform_3(%arg0: i32) -> (i32, i32) {
    %c0_i32 = arith.constant 0 : i32
    %c0_i32_0 = arith.constant 0 : i32
    %c0_i32_1 = arith.constant 0 : i32
    return %c0_i32, %c0_i32_0 : i32, i32
  }
  func.func @transform_4(%arg0: i32) -> (i32, i32) {
    %c0_i32 = arith.constant 0 : i32
    %c0_i32_0 = arith.constant 0 : i32
    %c0_i32_1 = arith.constant 0 : i32
    return %c0_i32, %c0_i32_0 : i32, i32
  }
  func.func @transform_5(%arg0: i32) -> (i32, i32) {
    %c0_i32 = arith.constant 0 : i32
    %c0_i32_0 = arith.constant 0 : i32
    %c0_i32_1 = arith.constant 0 : i32
    return %c0_i32, %c0_i32_0 : i32, i32
  }
  func.func @transform_6(%arg0: i32) -> (i32, i32) {
    %c0_i32 = arith.constant 0 : i32
    %c0_i32_0 = arith.constant 0 : i32
    %c0_i32_1 = arith.constant 0 : i32
    return %c0_i32, %c0_i32_0 : i32, i32
  }
  func.func @transform_7(%arg0: i32) -> (i32, i32) {
    %c0_i32 = arith.constant 0 : i32
    %c0_i32_0 = arith.constant 0 : i32
    return %arg0, %c0_i32 : i32, i32
  }
}

module attributes {stable_mosaic.version = 11 : i64} {
  func.func @_fused_mlp_kernel(%arg0: i32, %arg1: memref<104x128xbf16, #tpu.memory_space<vmem>>, %arg2: memref<128x128xbf16, #tpu.memory_space<vmem>>, %arg3: memref<1x128xf32, #tpu.memory_space<vmem>>, %arg4: memref<128x128xbf16, #tpu.memory_space<vmem>>, %arg5: memref<1x128xf32, #tpu.memory_space<vmem>>, %arg6: memref<128x128xbf16, #tpu.memory_space<vmem>>, %arg7: memref<1x128xf32, #tpu.memory_space<vmem>>, %arg8: memref<104x128xf32, #tpu.memory_space<vmem>>) attributes {dimension_semantics = [#tpu.dimension_semantics<parallel>], iteration_bounds = array<i64: 2>, scalar_prefetch = 0 : i64, scratch_operands = 0 : i64, tpu.core_type = #tpu.core_type<tc>, window_params = [{transform_indices = @transform_0, window_bounds = array<i64: 104, 128>}, {pipeline_mode = #tpu.pipeline_mode<synchronous>, transform_indices = @transform_1, window_bounds = array<i64: 128, 128>}, {pipeline_mode = #tpu.pipeline_mode<synchronous>, transform_indices = @transform_2, window_bounds = array<i64: 1, 128>}, {pipeline_mode = #tpu.pipeline_mode<synchronous>, transform_indices = @transform_3, window_bounds = array<i64: 128, 128>}, {pipeline_mode = #tpu.pipeline_mode<synchronous>, transform_indices = @transform_4, window_bounds = array<i64: 1, 128>}, {pipeline_mode = #tpu.pipeline_mode<synchronous>, transform_indices = @transform_5, window_bounds = array<i64: 128, 128>}, {pipeline_mode = #tpu.pipeline_mode<synchronous>, transform_indices = @transform_6, window_bounds = array<i64: 1, 128>}, {transform_indices = @transform_7, window_bounds = array<i64: 104, 128>}]} {
    %c0 = arith.constant 0 : index
    %c0_0 = arith.constant 0 : index
    %0 = vector.load %arg1[%c0, %c0_0] : memref<104x128xbf16, #tpu.memory_space<vmem>>, vector<104x128xbf16>
    %c0_1 = arith.constant 0 : index
    %c0_2 = arith.constant 0 : index
    %1 = vector.load %arg2[%c0_1, %c0_2] : memref<128x128xbf16, #tpu.memory_space<vmem>>, vector<128x128xbf16>
    %cst = arith.constant dense<0.000000e+00> : vector<104x128xf32>
    %2 = tpu.matmul %0, %1, %cst {dimension_numbers = #tpu.dot_dimension_numbers<[1], [0], [0], [1], [0, 0, 1, 1], [], []>} : vector<104x128xbf16>, vector<128x128xbf16>, vector<104x128xf32> -> vector<104x128xf32>
    %c0_3 = arith.constant 0 : index
    %c0_4 = arith.constant 0 : index
    %3 = vector.load %arg3[%c0_3, %c0_4] : memref<1x128xf32, #tpu.memory_space<vmem>>, vector<1x128xf32>
    %4 = vector.broadcast %3 : vector<1x128xf32> to vector<104x128xf32>
    %5 = arith.addf %2, %4 : vector<104x128xf32>
    %cst_5 = arith.constant 0.000000e+00 : f32
    %6 = vector.broadcast %cst_5 : f32 to vector<104x128xf32>
    %7 = arith.maximumf %5, %6 : vector<104x128xf32>
    %8 = arith.truncf %7 : vector<104x128xf32> to vector<104x128xbf16>
    %c0_6 = arith.constant 0 : index
    %c0_7 = arith.constant 0 : index
    %9 = vector.load %arg4[%c0_6, %c0_7] : memref<128x128xbf16, #tpu.memory_space<vmem>>, vector<128x128xbf16>
    %cst_8 = arith.constant dense<0.000000e+00> : vector<104x128xf32>
    %10 = tpu.matmul %8, %9, %cst_8 {dimension_numbers = #tpu.dot_dimension_numbers<[1], [0], [0], [1], [0, 0, 1, 1], [], []>} : vector<104x128xbf16>, vector<128x128xbf16>, vector<104x128xf32> -> vector<104x128xf32>
    %c0_9 = arith.constant 0 : index
    %c0_10 = arith.constant 0 : index
    %11 = vector.load %arg5[%c0_9, %c0_10] : memref<1x128xf32, #tpu.memory_space<vmem>>, vector<1x128xf32>
    %12 = vector.broadcast %11 : vector<1x128xf32> to vector<104x128xf32>
    %13 = arith.addf %10, %12 : vector<104x128xf32>
    %cst_11 = arith.constant 0.000000e+00 : f32
    %14 = vector.broadcast %cst_11 : f32 to vector<104x128xf32>
    %15 = arith.maximumf %13, %14 : vector<104x128xf32>
    %16 = arith.truncf %15 : vector<104x128xf32> to vector<104x128xbf16>
    %c0_12 = arith.constant 0 : index
    %c0_13 = arith.constant 0 : index
    %17 = vector.load %arg6[%c0_12, %c0_13] : memref<128x128xbf16, #tpu.memory_space<vmem>>, vector<128x128xbf16>
    %cst_14 = arith.constant dense<0.000000e+00> : vector<104x128xf32>
    %18 = tpu.matmul %16, %17, %cst_14 {dimension_numbers = #tpu.dot_dimension_numbers<[1], [0], [0], [1], [0, 0, 1, 1], [], []>} : vector<104x128xbf16>, vector<128x128xbf16>, vector<104x128xf32> -> vector<104x128xf32>
    %c0_15 = arith.constant 0 : index
    %c0_16 = arith.constant 0 : index
    %19 = vector.load %arg7[%c0_15, %c0_16] : memref<1x128xf32, #tpu.memory_space<vmem>>, vector<1x128xf32>
    %20 = vector.broadcast %19 : vector<1x128xf32> to vector<104x128xf32>
    %21 = arith.addf %18, %20 : vector<104x128xf32>
    %c0_17 = arith.constant 0 : index
    %c0_18 = arith.constant 0 : index
    %22 = vector.load %arg8[%c0_17, %c0_18] : memref<104x128xf32, #tpu.memory_space<vmem>>, vector<104x128xf32>
    tpu.vector_store %arg8[%c0_17, %c0_18], %21 {strides = array<i32>} : memref<104x128xf32, #tpu.memory_space<vmem>>, vector<104x128xf32>,
    return
  }
  func.func @transform_0(%arg0: i32) -> (i32, i32) {
    %c0_i32 = arith.constant 0 : i32
    %c0_i32_0 = arith.constant 0 : i32
    return %arg0, %c0_i32 : i32, i32
  }
  func.func @transform_1(%arg0: i32) -> (i32, i32) {
    %c0_i32 = arith.constant 0 : i32
    %c0_i32_0 = arith.constant 0 : i32
    %c0_i32_1 = arith.constant 0 : i32
    return %c0_i32, %c0_i32_0 : i32, i32
  }
  func.func @transform_2(%arg0: i32) -> (i32, i32) {
    %c0_i32 = arith.constant 0 : i32
    %c0_i32_0 = arith.constant 0 : i32
    %c0_i32_1 = arith.constant 0 : i32
    return %c0_i32, %c0_i32_0 : i32, i32
  }
  func.func @transform_3(%arg0: i32) -> (i32, i32) {
    %c0_i32 = arith.constant 0 : i32
    %c0_i32_0 = arith.constant 0 : i32
    %c0_i32_1 = arith.constant 0 : i32
    return %c0_i32, %c0_i32_0 : i32, i32
  }
  func.func @transform_4(%arg0: i32) -> (i32, i32) {
    %c0_i32 = arith.constant 0 : i32
    %c0_i32_0 = arith.constant 0 : i32
    %c0_i32_1 = arith.constant 0 : i32
    return %c0_i32, %c0_i32_0 : i32, i32
  }
  func.func @transform_5(%arg0: i32) -> (i32, i32) {
    %c0_i32 = arith.constant 0 : i32
    %c0_i32_0 = arith.constant 0 : i32
    %c0_i32_1 = arith.constant 0 : i32
    return %c0_i32, %c0_i32_0 : i32, i32
  }
  func.func @transform_6(%arg0: i32) -> (i32, i32) {
    %c0_i32 = arith.constant 0 : i32
    %c0_i32_0 = arith.constant 0 : i32
    %c0_i32_1 = arith.constant 0 : i32
    return %c0_i32, %c0_i32_0 : i32, i32
  }
  func.func @transform_7(%arg0: i32) -> (i32, i32) {
    %c0_i32 = arith.constant 0 : i32
    %c0_i32_0 = arith.constant 0 : i32
    return %arg0, %c0_i32 : i32, i32
  }
}

</mosaic_0001>

<bundles_post_ra>
// kernel: tpu_custom_call.1
= control target key start
LH: loop header
LB: loop body
LE: loop exit
PB: predicated region body
PF: predicated region fallthrough
CT: control target
= control target key end

     0   :  { %s1985_s0 = inlined_call_operand.hbm [shape: bf16[208,128], index: 0, kind: input, shape index: {}]   ;;  %s1986_s1 = inlined_call_operand.hbm [shape: bf16[128,128], index: 1, kind: input, shape index: {}]   ;;  %s1987_s2 = inlined_call_operand.vmem [shape: f32[1,128], index: 2, kind: input, shape index: {}]   ;;  %s1988_s3 = inlined_call_operand.hbm [shape: bf16[128,128], index: 3, kind: input, shape index: {}]   ;;  %s1989_s4 = inlined_call_operand.vmem [shape: f32[1,128], index: 4, kind: input, shape index: {}]   ;;  %s1990_s5 = inlined_call_operand.hbm [shape: bf16[128,128], index: 5, kind: input, shape index: {}]   ;;  %s1991_s6 = inlined_call_operand.vmem [shape: f32[1,128], index: 6, kind: input, shape index: {}]   ;;  %s1992_s7 = inlined_call_operand.hbm [shape: f32[208,128], index: 7, kind: output, shape index: {}]  }
   0x1   :  { %1999 = sst [smem:[#allocation15_spill]] %s1986_s1 }
   0x2   :  { %12 = vsyncpa [#allocation3], 0 }
   0x3   :  { %14 = vsyncpa [#allocation3 + $0x1], 0 }
   0x4   :  { %15 = vsyncpa [#allocation6], 0 }
   0x5   :  { %16 = vsyncpa [#allocation9], 0 }
   0x6   :  { %17 = vsyncpa [#allocation4], 0 }
   0x7   :  { %19 = vsyncpa [#allocation4 + $0x1], 0  ;;  %s1634_s24 = smov 0   ;;  %s1636_s25 = smov 0  }
   0x8   :  { %s1638_s26 = smov 0   ;;  %s1640_s27 = smov 0  }
   0x9 LB: > { %s1655_s28 = sadd.s32 4294967295, %s1581_s27   ;;  %s1043_s29 = sadd.s32 4294967294, %s1581_s27   ;;  %s1581_s27 = sphi %s1640_s27, %s2021_s27   ;;  %s1577_s26 = sphi %s1638_s26, %s2020_s26   ;;  %s1573_s25 = sphi %s1636_s25, %s2019_s25   ;;  %s1569_s24 = sphi %s1634_s24, %s2018_s24  }
   0xa   : > { %p45_p0 = scmp.ne.s32.totalorder %s1573_s25, %s1569_s24  ;;  %p1993_p1 = scmp.eq.s32.totalorder %s1655_s28, 0 }
   0xb   : > { %p195_p2 = scmp.eq.s32.totalorder %s1655_s28, 1  ;;  %p201_p3 = scmp.eq.s32.totalorder %s1043_s29, 1 }
   0xc   : > { %p1664_p4 = por %p1993_p1, %p45_p0  ;;  %p1044_p5 = scmp.ge.s32.totalorder %s1581_s27, 1 }
   0xd   : > { %p1669_p6 = por %p201_p3, %p45_p0  ;;  %p208_p7 = scmp.lt.s32.totalorder %s1581_s27, 3 }
   0xe   : > { %s2000_s30 = scalar_select %p1664_p4, 1, 0 }
   0xf   : > { %s2001_s8 = scalar_select %p1669_p6, 1, 0 }
  0x10   : > { %p1674_p8 = pnand %p1044_p5, %p208_p7  ;;  %s1583_s10 = smov [#allocation5]  }
  0x11   : > { %s220_s11 = sshll.u32 %s1583_s10, 4  ;;  %s1584_s13 = smov [#allocation7]   ;;  %s221_s11 = int_to_ptr.vmem [resolvable:$true] %s220_s11 }
  0x12   : > { %s2002_s9 = scalar_select %p1674_p8, 1, 0 }
  0x13   : > { %p1305_p9 = pneg %p1674_p8  ;;  %s236_s14 = sshll.u32 %s1584_s13, 4  ;;  %s237_s14 = int_to_ptr.vmem [resolvable:$true] %s236_s14 }
  0x14   : > { %s1585_s15 = smov [#allocation8]   ;;  %s1414_s17 = scalar_lea.vmem %s221_s11, 1024 }
  0x15   : > { %p1683_p11 = pnand %p1305_p9, %p1993_p1  ;;  %s252_s16 = sshll.u32 %s1585_s15, 4  ;;  %s253_s16 = int_to_ptr.vmem [resolvable:$true] %s252_s16 }
  0x16   : > { %p1415_p13 = scmp.ne.s32.totalorder %s221_s11, %s1414_s17  ;;  %p1422_p5 = scmp.lt.s32.totalorder %s221_s11, %s221_s11 }
  0x17   : > { %p1405_p12 = pneg %p1683_p11  ;;  %p1423_p7 = scmp.lt.s32.totalorder %s1414_s17, %s1414_s17 }
  0x19   : > { %p1417_p0 = pnand %p1415_p13, %p1405_p12  ;;  %p1424_p9 = por %p1423_p7, %p1422_p5 }
  0x1b   : > { %p1418_p3 = pneg %p1417_p0 }
  0x1d   : > { %p1425_p10 = pnand %p1424_p9, %p1418_p3 }
  0x1f   : > { %1428 = shalt.err (!%p1425_p10)
}
  0x20   : > { %s1994_s18 = smov 64   ;;  %s1995_s19 = smov 4  }
  0x21   : > { %s2004_s1 = sld [smem:[#allocation15_spill]]  ;;  %s1440_s22 = scalar_lea.vmem %s237_s14, 1024 }
  0x22   : > { %p1441_p13 = scmp.ne.s32.totalorder %s237_s14, %s1440_s22  ;;  %p1448_p3 = scmp.lt.s32.totalorder %s237_s14, %s237_s14 }
  0x23   : > { %p1449_p10 = scmp.lt.s32.totalorder %s1440_s22, %s1440_s22 }
  0x24   : > { %p1443_p0 = pnand %p1441_p13, %p1405_p12 }
  0x25   : > { %p1450_p7 = por %p1449_p10, %p1448_p3 }
  0x26   : > { %p1444_p5 = pneg %p1443_p0 }
  0x27   : > { %1308 = dma.hbm_to_vmem [thread:$0]  (!%p1683_p11), %s2004_s1, 1024, %s221_s11, [#allocation6], %s1994_s18, %s1994_s18, %s1995_s19  }
  0x28   : > { %p1451_p9 = pnand %p1450_p7, %p1444_p5 }
  0x2a   : > { %1454 = shalt.err (!%p1451_p9)
}
  0x2b   : > { %1311 = dma.hbm_to_vmem [thread:$0]  (!%p1683_p11), %s1988_s3, 1024, %s237_s14, [#allocation6], %s1994_s18, %s1994_s18, %s1995_s19  }
  0x2c   : > { %s1466_s10 = scalar_lea.vmem %s253_s16, 1024  ;;  %p1474_p3 = scmp.lt.s32.totalorder %s253_s16, %s253_s16 }
  0x2d   : > { %p1467_p1 = scmp.ne.s32.totalorder %s253_s16, %s1466_s10  ;;  %p1475_p5 = scmp.lt.s32.totalorder %s1466_s10, %s1466_s10 }
  0x2f   : > { %p1469_p13 = pnand %p1467_p1, %p1405_p12  ;;  %p1476_p10 = por %p1475_p5, %p1474_p3 }
  0x31   : > { %p1470_p0 = pneg %p1469_p13 }
  0x33   : > { %p1477_p7 = pnand %p1476_p10, %p1470_p0 }
  0x35   : > { %1480 = shalt.err (!%p1477_p7)
}
  0x36   : > { %1314 = dma.hbm_to_vmem [thread:$0]  (!%p1683_p11), %s1990_s5, 1024, %s253_s16, [#allocation9], %s1994_s18, %s1994_s18, %s1995_s19  }
  0x37   : > { %s1723_s14 = sadd.s32 1, %s1581_s27   ;;  %s32_s15 = sadd.s32 1, %s1577_s26 }
  0x38   : > { %s29_s12 = ssub.s32 %s1581_s27, %s1723_s14  ;;  %p39_p12 = scmp.ne.s32.totalorder %s1577_s26, %s1573_s25 }
  0x39   : > { %p30_p1 = scmp.eq.s32.totalorder %s29_s12, 0  ;;  %p40_p9 = scmp.eq.s32.totalorder %s1581_s27, 0 }
  0x3a   : > { %p1326_p13 = scmp.lt.s32.totalorder %s1581_s27, 2  ;;  %p1737_p3 = por %p195_p2, %p39_p12 }
  0x3b   : > { %s1733_s17 = scalar_select %p30_p1, %s1577_s26, %s32_s15  }
  0x3c   : > { %p41_p0 = por %p40_p9, %p39_p12  ;;  %s269_s21 = sand.u32 1, %s1577_s26  }
  0x3d   : > { %s2005_s20 = scalar_select %p1737_p3, 1, 0 }
  0x3e   : > { %s1091_s22 = smul.u32 832, %s1581_s27  ;;  %p1743_p11 = pnand %p1326_p13, %p41_p0 }
  0x3f   : > { %s1286_s16 = smul.u32 52, %s269_s21  ;;  %s1754_s15 = scalar_lea.sflag [#allocation3], %s269_s21 }
  0x40   : > { %s1750_s11 = scalar_lea.hbm %s1985_s0, %s1091_s22  ;;  %p1483_p5 = pneg %p1743_p11 }
  0x41   : > { %s273_s13 = scalar_lea.vmem [#allocation2], %s1286_s16  ;;  %s1481_s18 = scalar_lea.hbm %s1750_s11, 832 }
  0x42   : > { %s280_s12 = sshll.u32 %s273_s13, 4  ;;  %p1482_p2 = scmp.ne.s32.totalorder %s1750_s11, %s1481_s18  ;;  %s1752_s12 = int_to_ptr.vmem [resolvable:$true] %s280_s12 }
  0x43   : > { %s1486_s22 = scalar_lea.hbm %s1985_s0, 1664  ;;  %p1487_p1 = scmp.lt.s32.totalorder %s1750_s11, %s1985_s0 }
  0x44   : > { %p1484_p10 = pnand %p1483_p5, %p1482_p2  ;;  %p1488_p12 = scmp.lt.s32.totalorder %s1486_s22, %s1481_s18 }
  0x46   : > { %p1485_p7 = pneg %p1484_p10  ;;  %p1489_p9 = por %p1488_p12, %p1487_p1 }
  0x48   : > { %p1490_p13 = pnand %p1489_p9, %p1485_p7 }
  0x4a   : > { %1493 = shalt.err (!%p1490_p13)
}
  0x4b   : > { %s1494_s21 = scalar_lea.vmem %s1752_s12, 832  ;;  %s1588_s16 = smov [#allocation2]  }
  0x4c   : > { %p1495_p0 = scmp.ne.s32.totalorder %s1752_s12, %s1494_s21  ;;  %s1499_s13 = sshll.u32 %s1588_s16, 4  ;;  %s1500_s13 = int_to_ptr.vmem [resolvable:$false] %s1499_s13 }
  0x4d   : > { %s1501_s19 = scalar_lea.vmem %s1500_s13, 1664  ;;  %p1502_p10 = scmp.lt.s32.totalorder %s1752_s12, %s1500_s13 }
  0x4e   : > { %p1497_p6 = pnand %p1495_p0, %p1483_p5  ;;  %p1503_p3 = scmp.lt.s32.totalorder %s1501_s19, %s1494_s21 }
  0x50   : > { %p1498_p2 = pneg %p1497_p6  ;;  %p1504_p4 = por %p1503_p3, %p1502_p10 }
  0x52   : > { %p1505_p8 = pnand %p1504_p4, %p1498_p2 }
  0x54   : > { %1508 = shalt.err (!%p1505_p8)
}
  0x55   : > { %s2007_s1 = smov 4   ;;  %s2008_s18 = smov 64  }
  0x56   : > { %1318 = dma.hbm_to_vmem [thread:$0]  (!%p1743_p11), %s1750_s11, 832, %s1752_s12, %s1754_s15, %s2008_s18, %s2008_s18, %s2007_s1  }
  0x57   : > { %p2009_p6 = scmp.ne.s32.totalorder %s2002_s9, 0 }
  0x58   : > { %s1781_s29 = sand.u32 (!%p2009_p6), 1, %s1573_s25   ;;  %p2010_p4 = scmp.ne.s32.totalorder (!%p2009_p6), %s2000_s30, 0 }
  0x59   : > { %292 = sbr.rel (%p2009_p6) target bundleno = 800 (0x320), region = 48  ;;  %s295_s10 = scalar_lea.sflag (!%p2009_p6), [#allocation3], %s1781_s29 }
  0x5a   : > { %s1287_s22 = smul.u32 (!%p2009_p6), 52, %s1781_s29 }
  0x5c   : > { %s1785_s21 = scalar_lea.vmem (!%p2009_p6), [#allocation2], %s1287_s22 }
  0x5e   : > { %1552 = dma.done.wait (%p2010_p4), %s295_s10, 832  }
  0x5f   : > { %1554 = vsyncadd (%p2010_p4), %s295_s10, 4294966464  ;;  %p2011_p8 = scmp.eq.s32.totalorder %s1655_s28, 0 }
  0x61   : > { %1556 = dma.done.wait (%p2011_p8), [#allocation6], 2048   ;;  %p2012_p3 = pmov %p2011_p8 }
  0x63   : > { %1558 = vsyncadd (%p2012_p3), [#allocation6], 4294965248  ;;  %p2013_p11 = pmov %p2012_p3 }
  0x64   : > { %p2014_p5 = pmov %p2012_p3 }
  0x65   : > { %1560 = dma.done.wait (%p2013_p11), [#allocation9], 1024  }
  0x66   : > { %1562 = vsyncadd (%p2014_p5), [#allocation9], 4294966272  ;;  %v1589_v0 = vmov 0.0   ;;  %vm1590_vm0 = vmmov 0   ;;  %v1372_v1 = vld [vmem:[#allocation5 + $0x38] sm:$0xff]   ;;  %v1373_v2 = vld [vmem:[#allocation5 + $0x30] sm:$0xff]  }
  0x67   : > { %1138 = vmatprep.subr.bf16.mxu0 %v1589_v0  ;;  %1270 = vmatprep.subr.bf16.mxu1 %v1589_v0  ;;  %v1374_v3 = vld [vmem:[#allocation5 + $0x28] sm:$0xff]   ;;  %v1375_v4 = vld [vmem:[#allocation5 + $0x20] sm:$0xff]   ;;  %v1376_v5 = vld [vmem:[#allocation5 + $0x18] sm:$0xff]   ;;  %s1288_s12 = smul.u32 104, %s1781_s29  ;;  %p2015_p1 = scmp.ne.s32.totalorder %s2005_s20, 0 }
  0x68   : > { %1154 = vmatprep.mubr.msk.bf16.mxu0 %vm1590_vm0, %v1589_v0  ;;  %1170 = vmatprep.mubr.msk.bf16.mxu1 %vm1590_vm0, %v1589_v0  ;;  %v1377_v6 = vld [vmem:[#allocation5 + $0x10] sm:$0xff]   ;;  %v1378_v7 = vld [vmem:[#allocation5 + $0x8] sm:$0xff]   ;;  %v1379_v8 = vld [vmem:[#allocation5] sm:$0xff]   ;;  %s1092_s19 = smul.u32 1664, %s1655_s28  ;;  %s928_s28 = scalar_lea.sflag [#allocation4], %s1781_s29 }
  0x69   : > { %1139 = vmatpush3.bf16.msra.mxu0 %v1372_v1  ;;  %1278 = vmatpush3.bf16.msra.mxu1 %v1372_v1  ;;  %v1380_v9 = vld [vmem:[%s1785_s21] sm:$0xff]   ;;  %v1381_v13 = vld [vmem:[%s1785_s21 + $0x8] sm:$0xff]   ;;  %v1382_v17 = vld [vmem:[%s1785_s21 + $0x10] sm:$0xff]   ;;  %s1920_s13 = scalar_lea.vmem [#allocation10], %s1288_s12  ;;  %s1591_s30 = smov [#allocation10]  }
  0x6a   : > { %1140 = vmatprep.subr.bf16.mxu0 %v1589_v0  ;;  %1271 = vmatprep.subr.bf16.mxu1 %v1589_v0  ;;  %v1384_v10 = vld [vmem:[%s1785_s21 + $0x20] sm:$0xff]   ;;  %v1385_v14 = vld [vmem:[%s1785_s21 + $0x28] sm:$0xff]   ;;  %v1386_v18 = vld [vmem:[%s1785_s21 + $0x30] ss:$0 sps:$4 sm:$0xff]   ;;  %s941_s1 = sshll.u32 %s1920_s13, 4  ;;  %s1939_s10 = scalar_lea.hbm %s1992_s7, %s1092_s19  ;;  %s1941_s1 = int_to_ptr.vmem [resolvable:$true] %s941_s1 }
  0x6b   : > { %v1387_v11 = vld [vmem:[#allocation7 + $0x38] sm:$0xff]   ;;  %v1388_v12 = vld [vmem:[#allocation7 + $0x30] sm:$0xff]   ;;  %v1389_v15 = vld [vmem:[#allocation7 + $0x28] sm:$0xff]   ;;  %s1513_s9 = sshll.u32 %s1591_s30, 4  ;;  %s1514_s9 = int_to_ptr.vmem [resolvable:$false] %s1513_s9 }
  0x6c   : > { %v1390_v16 = vld [vmem:[#allocation7 + $0x20] sm:$0xff]   ;;  %v1391_v19 = vld [vmem:[#allocation7 + $0x18] sm:$0xff]   ;;  %v1392_v21 = vld [vmem:[#allocation7 + $0x10] sm:$0xff]   ;;  %s1515_s23 = scalar_lea.vmem %s1514_s9, 3328  ;;  %p1516_p13 = scmp.lt.s32.totalorder %s1941_s1, %s1514_s9 }
  0x6d   : > { %1141 = vmatpush3.bf16.msra.mxu0 %v1373_v2  ;;  %1279 = vmatpush3.bf16.msra.mxu1 %v1373_v2  ;;  %v1383_v20 = vld [vmem:[%s1785_s21 + $0x18] sm:$0xff]   ;;  %v1395_v24 = vld [vmem:[#allocation8 + $0x38] sm:$0xff]   ;;  %s1509_s21 = scalar_lea.vmem %s1941_s1, 1664 }
  0x6e   : > { %1142 = vmatprep.subr.bf16.mxu0 %v1589_v0  ;;  %1272 = vmatprep.subr.bf16.mxu1 %v1589_v0  ;;  %v1393_v22 = vld [vmem:[#allocation7 + $0x8] sm:$0xff]   ;;  %v1394_v23 = vld [vmem:[#allocation7] sm:$0xff]   ;;  %v1396_v25 = vld [vmem:[#allocation8 + $0x30] sm:$0xff]   ;;  %p1510_p7 = scmp.ne.s32.totalorder %s1941_s1, %s1509_s21  ;;  %p1517_p0 = scmp.lt.s32.totalorder %s1515_s23, %s1509_s21 }
  0x6f   : > { %v1397_v26 = vld [vmem:[#allocation8 + $0x28] sm:$0xff]   ;;  %v1398_v27 = vld [vmem:[#allocation8 + $0x20] sm:$0xff]   ;;  %v1399_v28 = vld [vmem:[#allocation8 + $0x18] sm:$0xff]  }
  0x70   : > { %v1400_v29 = vld [vmem:[#allocation8 + $0x10] sm:$0xff]   ;;  %v1858_v30 = vld [vmem:[%s1987_s2] ss:$0 sm:$0xff]  ;;  %p1511_p12 = pnand %p1510_p7, %p2015_p1  ;;  %p1518_p2 = por %p1517_p0, %p1516_p13 }
  0x71   : > { %1143 = vmatpush3.bf16.msra.mxu0 %v1374_v3  ;;  %1280 = vmatpush3.bf16.msra.mxu1 %v1374_v3 }
  0x72   : > { %1144 = vmatprep.subr.bf16.mxu0 %v1589_v0  ;;  %1273 = vmatprep.subr.bf16.mxu1 %v1589_v0  ;;  %p1512_p9 = pneg %p1511_p12 }
  0x74   : > { %p1519_p10 = pnand %p1518_p2, %p1512_p9 }
  0x75   : > { %1145 = vmatpush3.bf16.msra.mxu0 %v1375_v4  ;;  %1281 = vmatpush3.bf16.msra.mxu1 %v1375_v4 }
  0x76   : > { %1146 = vmatprep.subr.bf16.mxu0 %v1589_v0  ;;  %1274 = vmatprep.subr.bf16.mxu1 %v1589_v0 }
  0x79   : > { %1147 = vmatpush3.bf16.msra.mxu0 %v1376_v5  ;;  %1282 = vmatpush3.bf16.msra.mxu1 %v1376_v5 }
  0x7a   : > { %1148 = vmatprep.subr.bf16.mxu0 %v1589_v0  ;;  %1275 = vmatprep.subr.bf16.mxu1 %v1589_v0 }
  0x7d   : > { %1149 = vmatpush3.bf16.msra.mxu0 %v1377_v6  ;;  %1283 = vmatpush3.bf16.msra.mxu1 %v1377_v6 }
  0x7e   : > { %1150 = vmatprep.subr.bf16.mxu0 %v1589_v0  ;;  %1276 = vmatprep.subr.bf16.mxu1 %v1589_v0 }
  0x81   : > { %1151 = vmatpush3.bf16.msra.mxu0 %v1378_v7  ;;  %1284 = vmatpush3.bf16.msra.mxu1 %v1378_v7 }
  0x82   : > { %1152 = vmatprep.subr.bf16.mxu0 %v1589_v0  ;;  %1277 = vmatprep.subr.bf16.mxu1 %v1589_v0 }
  0x85   : > { %1153 = vmatpush3.bf16.msra.mxu0 %v1379_v8  ;;  %1285 = vmatpush3.bf16.msra.mxu1 %v1379_v8 }
  0x86   : > { %1182 = vmatprep.subr.bf16.mxu1 %v1589_v0  ;;  %1226 = vmatprep.subr.bf16.mxu0 %v1589_v0 }
  0x88   : > { %1155 = vmatmul.mubr.bf16.vlgmr.msra.gmra.mxu0 %v1380_v9  ;;  %1171 = vmatmul.mubr.bf16.vlgmr.msra.gmra.mxu1 %v1384_v10 }
  0x89   : > { %1158 = vmatprep.mubr.msk.bf16.mxu0 %vm1590_vm0, %v1589_v0  ;;  %1174 = vmatprep.mubr.msk.bf16.mxu1 %vm1590_vm0, %v1589_v0 }
  0x8a   : > { %1183 = vmatpush3.bf16.msra.mxu1 %v1387_v11  ;;  %1227 = vmatpush3.bf16.msra.mxu0 %v1395_v24 }
  0x8b   : > { %1184 = vmatprep.subr.bf16.mxu1 %v1589_v0  ;;  %1228 = vmatprep.subr.bf16.mxu0 %v1589_v0 }
  0x8e   : > { %1185 = vmatpush3.bf16.msra.mxu1 %v1388_v12  ;;  %1229 = vmatpush3.bf16.msra.mxu0 %v1396_v25 }
  0x8f   : > { %1186 = vmatprep.subr.bf16.mxu1 %v1589_v0  ;;  %1230 = vmatprep.subr.bf16.mxu0 %v1589_v0 }
  0x90   : > { %1159 = vmatmul.mubr.bf16.gmra.mxu0 %v1381_v13  ;;  %1175 = vmatmul.mubr.bf16.gmra.mxu1 %v1385_v14 }
  0x91   : > { %1162 = vmatprep.mubr.msk.bf16.mxu0 %vm1590_vm0, %v1589_v0  ;;  %1178 = vmatprep.mubr.msk.bf16.mxu1 %vm1590_vm0, %v1589_v0 }
  0x92   : > { %1187 = vmatpush3.bf16.msra.mxu1 %v1389_v15  ;;  %1231 = vmatpush3.bf16.msra.mxu0 %v1397_v26 }
  0x93   : > { %1188 = vmatprep.subr.bf16.mxu1 %v1589_v0  ;;  %1232 = vmatprep.subr.bf16.mxu0 %v1589_v0 }
  0x96   : > { %1189 = vmatpush3.bf16.msra.mxu1 %v1390_v16  ;;  %1233 = vmatpush3.bf16.msra.mxu0 %v1398_v27 }
  0x97   : > { %1190 = vmatprep.subr.bf16.mxu1 %v1589_v0  ;;  %1234 = vmatprep.subr.bf16.mxu0 %v1589_v0 }
  0x98   : > { %1163 = vmatmul.mubr.bf16.gmra.mxu0 %v1382_v17  ;;  %1179 = vmatmul.mubr.bf16.gmra.mxu1 %v1386_v18 }
  0x99   : > { %1166 = vmatprep.mubr.msk.bf16.mxu0 %vm1590_vm0, %v1589_v0  ;;  %1198 = vmatprep.mubr.msk.bf16.mxu1 %vm1590_vm0, %v1589_v0 }
  0x9a   : > { %1191 = vmatpush3.bf16.msra.mxu1 %v1391_v19  ;;  %1235 = vmatpush3.bf16.msra.mxu0 %v1399_v28 }
  0x9b   : > { %1192 = vmatprep.subr.bf16.mxu1 %v1589_v0  ;;  %1236 = vmatprep.subr.bf16.mxu0 %v1589_v0 }
  0x9e   : > { %1193 = vmatpush3.bf16.msra.mxu1 %v1392_v21  ;;  %1237 = vmatpush3.bf16.msra.mxu0 %v1400_v29  ;;  %v1401_v29 = vld [vmem:[#allocation8 + $0x8] sm:$0xff]  }
  0x9f   : > { %1194 = vmatprep.subr.bf16.mxu1 %v1589_v0  ;;  %1238 = vmatprep.subr.bf16.mxu0 %v1589_v0 }
  0xa0   : > { %1167 = vmatmul.mubr.bf16.gmra.mxu0 %v1383_v20 }
  0xa1   : > { %1242 = vmatprep.mubr.msk.bf16.mxu0 %vm1590_vm0, %v1589_v0 }
  0xa2   : > { %1195 = vmatpush3.bf16.msra.mxu1 %v1393_v22  ;;  %1239 = vmatpush3.bf16.msra.mxu0 %v1401_v29 }
  0xa3   : > { %1196 = vmatprep.subr.bf16.mxu1 %v1589_v0  ;;  %1240 = vmatprep.subr.bf16.mxu0 %v1589_v0 }
  0xa6   : > { %1197 = vmatpush3.bf16.msra.mxu1 %v1394_v23 }
 0x148   : > { %v502_v31 = vpop.f32.mrf.mxu0  ;;  %v534_v32 = vpop.f32.mrf.mxu1 }
 0x149   : > { %v503_v35 = vadd.f32 %v1858_v30, %v502_v31  ;;  %v535_v15 = vadd.f32 %v1858_v30, %v534_v32  ;;  %v1402_v31 = vld [vmem:[#allocation8] sm:$0xff]   ;;  %v1889_v32 = vld [vmem:[%s1989_s4] ss:$0 sm:$0xff] }
 0x14a   : > { %v1156_v33 = vpop.f32.mrf.mxu0  ;;  %v1172_v34 = vpop.f32.mrf.mxu1  ;;  %1241 = vmatpush3.bf16.msra.mxu0 %v1402_v31  ;;  %v1079_v31 = vld [vmem:[%s1991_s6] ss:$0 sm:$0xff] }
 0x14b   : > { %v556_v41 = vmax.f32 %v503_v35, 0.0  ;;  %v564_v18 = vmax.f32 %v535_v15, 0.0 }
 0x14c   : > { %v505_v36 = vpop.f32.mrf.mxu0  ;;  %v537_v37 = vpop.f32.mrf.mxu1 }
 0x14d   : > { %v506_v38 = vadd.f32 %v1858_v30, %v505_v36  ;;  %v538_v17 = vadd.f32 %v1858_v30, %v537_v37 }
 0x14e   : > { %v1157_v39 = vpop.f32.mrf.mxu0  ;;  %v1173_v40 = vpop.f32.mrf.mxu1 }
 0x14f   : > { %v557_v42 = vmax.f32 %v506_v38, 0.0  ;;  %v565_v19 = vmax.f32 %v538_v17, 0.0 }
 0x150   : > { %v510_v43 = vpop.f32.mrf.mxu0  ;;  %v542_v44 = vpop.f32.mrf.mxu1 }
 0x151   : > { %v569_v45 = vpack.c.bf16 %v557_v42, %v556_v41  ;;  %v511_v48 = vadd.f32 %v1858_v30, %v510_v43  ;;  %v573_v20 = vpack.c.bf16 %v565_v19, %v564_v18  ;;  %v543_v21 = vadd.f32 %v1858_v30, %v542_v44 }
 0x152   : > { %v1160_v46 = vpop.f32.mrf.mxu0  ;;  %v1176_v47 = vpop.f32.mrf.mxu1 }
 0x153   : > { %1199 = vmatmul.mubr.bf16.vlgmr.msra.gmra.mxu1 %v569_v45  ;;  %v558_v54 = vmax.f32 %v511_v48, 0.0  ;;  %v566_v23 = vmax.f32 %v543_v21, 0.0 }
 0x154   : > { %v513_v49 = vpop.f32.mrf.mxu0  ;;  %1202 = vmatprep.mubr.msk.bf16.mxu1 %vm1590_vm0, %v1589_v0  ;;  %v545_v50 = vpop.f32.mrf.mxu1 }
 0x155   : > { %v514_v51 = vadd.f32 %v1858_v30, %v513_v49  ;;  %v546_v22 = vadd.f32 %v1858_v30, %v545_v50 }
 0x156   : > { %v1161_v52 = vpop.f32.mrf.mxu0  ;;  %v1177_v53 = vpop.f32.mrf.mxu1 }
 0x157   : > { %v559_v55 = vmax.f32 %v514_v51, 0.0  ;;  %v567_v24 = vmax.f32 %v546_v22, 0.0 }
 0x158   : > { %v518_v56 = vpop.f32.mrf.mxu0  ;;  %v550_v57 = vpop.f32.mrf.mxu1 }
 0x159   : > { %v570_v58 = vpack.c.bf16 %v559_v55, %v558_v54  ;;  %v519_v61 = vadd.f32 %v1858_v30, %v518_v56  ;;  %v551_v25 = vadd.f32 %v1858_v30, %v550_v57  ;;  %v574_v26 = vpack.c.bf16 %v567_v24, %v566_v23 }
 0x15a   : > { %v1164_v59 = vpop.f32.mrf.mxu0  ;;  %v1180_v60 = vpop.f32.mrf.mxu1 }
 0x15b   : > { %1203 = vmatmul.mubr.bf16.gmra.mxu1 %v570_v58  ;;  %v560_v4 = vmax.f32 %v519_v61, 0.0  ;;  %v568_v27 = vmax.f32 %v551_v25, 0.0 }
 0x15c   : > { %v521_v62 = vpop.f32.mrf.mxu0  ;;  %1206 = vmatprep.mubr.msk.bf16.mxu1 %vm1590_vm0, %v1589_v0  ;;  %v553_v63 = vpop.f32.mrf.mxu1 }
 0x15d   : > { %v522_v1 = vadd.f32 %v1858_v30, %v521_v62  ;;  %v575_v28 = vpack.c.bf16 %v568_v27, %v568_v27 }
 0x15e   : > { %v1165_v2 = vpop.f32.mrf.mxu0  ;;  %v1181_v3 = vpop.f32.mrf.mxu1 }
 0x15f   : > { %v561_v5 = vmax.f32 %v522_v1, 0.0 }
 0x160   : > { %v526_v6 = vpop.f32.mrf.mxu0 }
 0x161   : > { %v571_v7 = vpack.c.bf16 %v561_v5, %v560_v4  ;;  %v527_v9 = vadd.f32 %v1858_v30, %v526_v6 }
 0x162   : > { %v1168_v8 = vpop.f32.mrf.mxu0 }
 0x163   : > { %1207 = vmatmul.mubr.bf16.gmra.mxu1 %v571_v7  ;;  %v562_v13 = vmax.f32 %v527_v9, 0.0 }
 0x164   : > { %v529_v10 = vpop.f32.mrf.mxu0  ;;  %1210 = vmatprep.mubr.msk.bf16.mxu1 %vm1590_vm0, %v1589_v0 }
 0x165   : > { %v530_v11 = vadd.f32 %v1858_v30, %v529_v10 }
 0x166   : > { %v1169_v12 = vpop.f32.mrf.mxu0 }
 0x167   : > { %v563_v14 = vmax.f32 %v530_v11, 0.0 }
 0x169   : > { %v572_v16 = vpack.c.bf16 %v563_v14, %v562_v13 }
 0x16b   : > { %1211 = vmatmul.mubr.bf16.gmra.mxu1 %v572_v16 }
 0x16c   : > { %1214 = vmatprep.mubr.msk.bf16.mxu1 %vm1590_vm0, %v1589_v0 }
 0x173   : > { %1215 = vmatmul.mubr.bf16.gmra.mxu1 %v573_v20 }
 0x174   : > { %1218 = vmatprep.mubr.msk.bf16.mxu1 %vm1590_vm0, %v1589_v0 }
 0x17b   : > { %1219 = vmatmul.mubr.bf16.gmra.mxu1 %v574_v26 }
 0x17c   : > { %1222 = vmatprep.mubr.msk.bf16.mxu1 %vm1590_vm0, %v1589_v0 }
 0x183   : > { %1223 = vmatmul.mubr.bf16.gmra.mxu1 %v575_v28 }
 0x213   : > { %v681_v30 = vpop.f32.mrf.mxu1 }
 0x214   : > { %v682_v34 = vadd.f32 %v1889_v32, %v681_v30 }
 0x215   : > { %v1200_v33 = vpop.f32.mrf.mxu1 }
 0x216   : > { %v735_v38 = vmax.f32 %v682_v34, 0.0 }
 0x217   : > { %v684_v35 = vpop.f32.mrf.mxu1 }
 0x218   : > { %v685_v36 = vadd.f32 %v1889_v32, %v684_v35 }
 0x219   : > { %v1201_v37 = vpop.f32.mrf.mxu1 }
 0x21a   : > { %v736_v39 = vmax.f32 %v685_v36, 0.0 }
 0x21b   : > { %v689_v40 = vpop.f32.mrf.mxu1 }
 0x21c   : > { %v748_v41 = vpack.c.bf16 %v736_v39, %v735_v38  ;;  %v690_v43 = vadd.f32 %v1889_v32, %v689_v40 }
 0x21d   : > { %v1204_v42 = vpop.f32.mrf.mxu1 }
 0x21e   : > { %1243 = vmatmul.mubr.bf16.vlgmr.msra.gmra.mxu0 %v748_v41  ;;  %v737_v47 = vmax.f32 %v690_v43, 0.0 }
 0x21f   : > { %v692_v44 = vpop.f32.mrf.mxu1  ;;  %1246 = vmatprep.mubr.msk.bf16.mxu0 %vm1590_vm0, %v1589_v0 }
 0x220   : > { %v693_v45 = vadd.f32 %v1889_v32, %v692_v44 }
 0x221   : > { %v1205_v46 = vpop.f32.mrf.mxu1 }
 0x222   : > { %v738_v48 = vmax.f32 %v693_v45, 0.0 }
 0x223   : > { %v697_v49 = vpop.f32.mrf.mxu1 }
 0x224   : > { %v749_v50 = vpack.c.bf16 %v738_v48, %v737_v47  ;;  %v698_v52 = vadd.f32 %v1889_v32, %v697_v49 }
 0x225   : > { %v1208_v51 = vpop.f32.mrf.mxu1 }
 0x226   : > { %1247 = vmatmul.mubr.bf16.gmra.mxu0 %v749_v50  ;;  %v739_v56 = vmax.f32 %v698_v52, 0.0 }
 0x227   : > { %v700_v53 = vpop.f32.mrf.mxu1  ;;  %1250 = vmatprep.mubr.msk.bf16.mxu0 %vm1590_vm0, %v1589_v0 }
 0x228   : > { %v701_v54 = vadd.f32 %v1889_v32, %v700_v53 }
 0x229   : > { %v1209_v55 = vpop.f32.mrf.mxu1 }
 0x22a   : > { %v740_v57 = vmax.f32 %v701_v54, 0.0 }
 0x22b   : > { %v705_v58 = vpop.f32.mrf.mxu1 }
 0x22c   : > { %v750_v59 = vpack.c.bf16 %v740_v57, %v739_v56  ;;  %v706_v61 = vadd.f32 %v1889_v32, %v705_v58 }
 0x22d   : > { %v1212_v60 = vpop.f32.mrf.mxu1 }
 0x22e   : > { %1251 = vmatmul.mubr.bf16.gmra.mxu0 %v750_v59  ;;  %v741_v2 = vmax.f32 %v706_v61, 0.0 }
 0x22f   : > { %v708_v62 = vpop.f32.mrf.mxu1  ;;  %1254 = vmatprep.mubr.msk.bf16.mxu0 %vm1590_vm0, %v1589_v0 }
 0x230   : > { %v709_v63 = vadd.f32 %v1889_v32, %v708_v62 }
 0x231   : > { %v1213_v1 = vpop.f32.mrf.mxu1 }
 0x232   : > { %v742_v3 = vmax.f32 %v709_v63, 0.0 }
 0x233   : > { %v713_v4 = vpop.f32.mrf.mxu1 }
 0x234   : > { %v751_v5 = vpack.c.bf16 %v742_v3, %v741_v2  ;;  %v714_v7 = vadd.f32 %v1889_v32, %v713_v4 }
 0x235   : > { %v1216_v6 = vpop.f32.mrf.mxu1 }
 0x236   : > { %1255 = vmatmul.mubr.bf16.gmra.mxu0 %v751_v5  ;;  %v743_v11 = vmax.f32 %v714_v7, 0.0 }
 0x237   : > { %v716_v8 = vpop.f32.mrf.mxu1  ;;  %1258 = vmatprep.mubr.msk.bf16.mxu0 %vm1590_vm0, %v1589_v0 }
 0x238   : > { %v717_v9 = vadd.f32 %v1889_v32, %v716_v8 }
 0x239   : > { %v1217_v10 = vpop.f32.mrf.mxu1 }
 0x23a   : > { %v744_v12 = vmax.f32 %v717_v9, 0.0 }
 0x23b   : > { %v721_v13 = vpop.f32.mrf.mxu1 }
 0x23c   : > { %v752_v14 = vpack.c.bf16 %v744_v12, %v743_v11  ;;  %v722_v16 = vadd.f32 %v1889_v32, %v721_v13 }
 0x23d   : > { %v1220_v15 = vpop.f32.mrf.mxu1 }
 0x23e   : > { %1259 = vmatmul.mubr.bf16.gmra.mxu0 %v752_v14  ;;  %v745_v20 = vmax.f32 %v722_v16, 0.0 }
 0x23f   : > { %v724_v17 = vpop.f32.mrf.mxu1  ;;  %1262 = vmatprep.mubr.msk.bf16.mxu0 %vm1590_vm0, %v1589_v0 }
 0x240   : > { %v725_v18 = vadd.f32 %v1889_v32, %v724_v17 }
 0x241   : > { %v1221_v19 = vpop.f32.mrf.mxu1 }
 0x242   : > { %v746_v21 = vmax.f32 %v725_v18, 0.0 }
 0x243   : > { %v729_v22 = vpop.f32.mrf.mxu1 }
 0x244   : > { %v753_v23 = vpack.c.bf16 %v746_v21, %v745_v20  ;;  %v730_v24 = vadd.f32 %v1889_v32, %v729_v22 }
 0x245   : > { %v1224_v25 = vpop.f32.mrf.mxu1 }
 0x246   : > { %v747_v26 = vmax.f32 %v730_v24, 0.0  ;;  %1263 = vmatmul.mubr.bf16.gmra.mxu0 %v753_v23 }
 0x247   : > { %v732_v27 = vpop.f32.mrf.mxu1  ;;  %1266 = vmatprep.mubr.msk.bf16.mxu0 %vm1590_vm0, %v1589_v0 }
 0x248   : > { %v754_v29 = vpack.c.bf16 %v747_v26, %v747_v26 }
 0x249   : > { %v1225_v28 = vpop.f32.mrf.mxu1 }
 0x24e   : > { %1267 = vmatmul.mubr.bf16.gmra.mxu0 %v754_v29 }
 0x2de   : > { %v860_v30 = vpop.f32.mrf.mxu0 }
 0x2df   : > { %v861_v33 = vadd.f32 %v1079_v31, %v860_v30 }
 0x2e0   : > { %v1244_v34 = vpop.f32.mrf.mxu0 }
 0x2e1   : > { %914 = vst [vmem:[%s1920_s13] sm:$0xff] %v861_v33 }
 0x2e2   : > { %v863_v0 = vpop.f32.mrf.mxu0 }
 0x2e3   : > { %v864_v32 = vadd.f32 %v1079_v31, %v863_v0 }
 0x2e4   : > { %v1245_v35 = vpop.f32.mrf.mxu0 }
 0x2e5   : > { %915 = vst [vmem:[%s1920_s13 + $0x8] sm:$0xff] %v864_v32 }
 0x2e6   : > { %v868_v36 = vpop.f32.mrf.mxu0 }
 0x2e7   : > { %v869_v37 = vadd.f32 %v1079_v31, %v868_v36 }
 0x2e8   : > { %v1248_v38 = vpop.f32.mrf.mxu0 }
 0x2e9   : > { %916 = vst [vmem:[%s1920_s13 + $0x10] sm:$0xff] %v869_v37 }
 0x2ea   : > { %v871_v39 = vpop.f32.mrf.mxu0 }
 0x2eb   : > { %v872_v40 = vadd.f32 %v1079_v31, %v871_v39 }
 0x2ec   : > { %v1249_v41 = vpop.f32.mrf.mxu0 }
 0x2ed   : > { %917 = vst [vmem:[%s1920_s13 + $0x18] sm:$0xff] %v872_v40 }
 0x2ee   : > { %v876_v42 = vpop.f32.mrf.mxu0 }
 0x2ef   : > { %v877_v43 = vadd.f32 %v1079_v31, %v876_v42 }
 0x2f0   : > { %v1252_v44 = vpop.f32.mrf.mxu0 }
 0x2f1   : > { %918 = vst [vmem:[%s1920_s13 + $0x20] sm:$0xff] %v877_v43 }
 0x2f2   : > { %v879_v45 = vpop.f32.mrf.mxu0 }
 0x2f3   : > { %v880_v46 = vadd.f32 %v1079_v31, %v879_v45 }
 0x2f4   : > { %v1253_v47 = vpop.f32.mrf.mxu0 }
 0x2f5   : > { %919 = vst [vmem:[%s1920_s13 + $0x28] sm:$0xff] %v880_v46 }
 0x2f6   : > { %v884_v48 = vpop.f32.mrf.mxu0 }
 0x2f7   : > { %v885_v49 = vadd.f32 %v1079_v31, %v884_v48 }
 0x2f8   : > { %v1256_v50 = vpop.f32.mrf.mxu0 }
 0x2f9   : > { %920 = vst [vmem:[%s1920_s13 + $0x30] sm:$0xff] %v885_v49 }
 0x2fa   : > { %v887_v51 = vpop.f32.mrf.mxu0 }
 0x2fb   : > { %v888_v52 = vadd.f32 %v1079_v31, %v887_v51 }
 0x2fc   : > { %v1257_v53 = vpop.f32.mrf.mxu0 }
 0x2fd   : > { %921 = vst [vmem:[%s1920_s13 + $0x38] sm:$0xff] %v888_v52 }
 0x2fe   : > { %v892_v54 = vpop.f32.mrf.mxu0 }
 0x2ff   : > { %v893_v55 = vadd.f32 %v1079_v31, %v892_v54 }
 0x300   : > { %v1260_v56 = vpop.f32.mrf.mxu0 }
 0x301   : > { %922 = vst [vmem:[%s1920_s13 + $0x40] sm:$0xff] %v893_v55 }
 0x302   : > { %v895_v57 = vpop.f32.mrf.mxu0 }
 0x303   : > { %v896_v58 = vadd.f32 %v1079_v31, %v895_v57 }
 0x304   : > { %v1261_v59 = vpop.f32.mrf.mxu0 }
 0x305   : > { %923 = vst [vmem:[%s1920_s13 + $0x48] sm:$0xff] %v896_v58 }
 0x306   : > { %v900_v60 = vpop.f32.mrf.mxu0 }
 0x307   : > { %v901_v61 = vadd.f32 %v1079_v31, %v900_v60 }
 0x308   : > { %v1264_v62 = vpop.f32.mrf.mxu0 }
 0x309   : > { %924 = vst [vmem:[%s1920_s13 + $0x50] sm:$0xff] %v901_v61 }
 0x30a   : > { %v903_v63 = vpop.f32.mrf.mxu0 }
 0x30b   : > { %v904_v1 = vadd.f32 %v1079_v31, %v903_v63 }
 0x30c   : > { %v1265_v2 = vpop.f32.mrf.mxu0 }
 0x30d   : > { %925 = vst [vmem:[%s1920_s13 + $0x58] sm:$0xff] %v904_v1 }
 0x30e   : > { %v908_v3 = vpop.f32.mrf.mxu0 }
 0x30f   : > { %v909_v4 = vadd.f32 %v1079_v31, %v908_v3 }
 0x310   : > { %v1268_v5 = vpop.f32.mrf.mxu0 }
 0x311   : > { %926 = vst [vmem:[%s1920_s13 + $0x60] sm:$0xff] %v909_v4 }
 0x312   : > { %v911_v6 = vpop.f32.mrf.mxu0 }
 0x313   : > { %1522 = shalt.err (!%p1519_p10)
}
 0x314   : > { %s1523_s11 = scalar_lea.hbm %s1939_s10, 1664  ;;  %s1527_s16 = scalar_lea.hbm %s1992_s7, 3328 }
 0x315   : > { %p1524_p6 = scmp.ne.s32.totalorder %s1939_s10, %s1523_s11  ;;  %p1528_p3 = scmp.lt.s32.totalorder %s1939_s10, %s1992_s7 }
 0x316   : > { %p1529_p11 = scmp.lt.s32.totalorder %s1527_s16, %s1523_s11 }
 0x317   : > { %p1525_p4 = pnand %p1524_p6, %p2015_p1 }
 0x318   : > { %p1530_p5 = por %p1529_p11, %p1528_p3 }
 0x319   : > { %p1526_p8 = pneg %p1525_p4 }
 0x31b   : > { %p1531_p7 = pnand %p1530_p5, %p1526_p8 }
 0x31d   : > { %1534 = shalt.err (!%p1531_p7)
}
 0x31e   : > { %s1592_s18 = smov 128   ;;  %s1593_s22 = smov 8   ;;  %v1269_v7 = vpop.f32.mrf.mxu0 }
 0x31f   : > { %1303 = dma.vmem_to_hbm [thread:$0]  (%p2015_p1), %s1941_s1, 1664, %s1939_s10, %s928_s28, %s1592_s18, %s1592_s18, %s1593_s22  }
 0x320 PF: > { %s956_s21 = sand.u32 1, %s1569_s24   ;;  %p2016_p12 = scmp.ne.s32.totalorder %s2001_s8, 0 }
 0x321   : > { %p2017_p9 = scmp.ge.s32.totalorder %s1581_s27, 2  ;;  %s957_s30 = scalar_lea.sflag [#allocation4], %s956_s21 }
 0x323   : > { %p1320_p13 = pnand %p2017_p9, %p2016_p12 }
 0x325   : > { %p1321_p0 = pneg %p1320_p13 }
 0x327   : > { %1564 = dma.done.wait (%p1321_p0), %s957_s30, 1664  }
 0x328   : > { %1566 = vsyncadd (%p1321_p0), %s957_s30, 4294965632  ;;  %p22_p2 = scmp.ge.s32.totalorder %s1723_s14, 4   ;;  %s2018_s24 = smov %s1573_s25 }
 0x329   : > { %s2019_s25 = smov %s1577_s26  ;;  %s2020_s26 = smov %s1733_s17 }
 0x32a   : > { %s2021_s27 = smov %s1723_s14  ;;  %24 = sbr.rel (!%p22_p2) target bundleno = 9 (0x9), region = 105 }
 0x32f   :  { %962 = vsyncpa [#allocation3], 1 }
 0x330   :  { %964 = vsyncpa [#allocation3 + $0x1], 1 }
 0x331   :  { %965 = vsyncpa [#allocation6], 1 }
 0x332   :  { %966 = vsyncpa [#allocation9], 1 }
 0x333   :  { %967 = vsyncpa [#allocation4], 1 }
 0x334   :  { %969 = vsyncpa [#allocation4 + $0x1], 1 }

// kernel: tpu_custom_call.1
= control target key start
LH: loop header
LB: loop body
LE: loop exit
PB: predicated region body
PF: predicated region fallthrough
CT: control target
= control target key end

     0   :  { %s1985_s0 = inlined_call_operand.hbm [shape: bf16[208,128], index: 0, kind: input, shape index: {}]   ;;  %s1986_s1 = inlined_call_operand.hbm [shape: bf16[128,128], index: 1, kind: input, shape index: {}]   ;;  %s1987_s2 = inlined_call_operand.vmem [shape: f32[1,128], index: 2, kind: input, shape index: {}]   ;;  %s1988_s3 = inlined_call_operand.hbm [shape: bf16[128,128], index: 3, kind: input, shape index: {}]   ;;  %s1989_s4 = inlined_call_operand.vmem [shape: f32[1,128], index: 4, kind: input, shape index: {}]   ;;  %s1990_s5 = inlined_call_operand.hbm [shape: bf16[128,128], index: 5, kind: input, shape index: {}]   ;;  %s1991_s6 = inlined_call_operand.vmem [shape: f32[1,128], index: 6, kind: input, shape index: {}]   ;;  %s1992_s7 = inlined_call_operand.hbm [shape: f32[208,128], index: 7, kind: output, shape index: {}]  }
   0x1   :  { %1999 = sst [smem:[#allocation15_spill]] %s1986_s1 }
   0x2   :  { %12 = vsyncpa [#allocation3], 0 }
   0x3   :  { %14 = vsyncpa [#allocation3 + $0x1], 0 }
   0x4   :  { %15 = vsyncpa [#allocation6], 0 }
   0x5   :  { %16 = vsyncpa [#allocation9], 0 }
   0x6   :  { %17 = vsyncpa [#allocation4], 0 }
   0x7   :  { %19 = vsyncpa [#allocation4 + $0x1], 0  ;;  %s1634_s24 = smov 0   ;;  %s1636_s25 = smov 0  }
   0x8   :  { %s1638_s26 = smov 0   ;;  %s1640_s27 = smov 0  }
   0x9 LB: > { %s1655_s28 = sadd.s32 4294967295, %s1581_s27   ;;  %s1043_s29 = sadd.s32 4294967294, %s1581_s27   ;;  %s1581_s27 = sphi %s1640_s27, %s2021_s27   ;;  %s1577_s26 = sphi %s1638_s26, %s2020_s26   ;;  %s1573_s25 = sphi %s1636_s25, %s2019_s25   ;;  %s1569_s24 = sphi %s1634_s24, %s2018_s24  }
   0xa   : > { %p45_p0 = scmp.ne.s32.totalorder %s1573_s25, %s1569_s24  ;;  %p1993_p1 = scmp.eq.s32.totalorder %s1655_s28, 0 }
   0xb   : > { %p195_p2 = scmp.eq.s32.totalorder %s1655_s28, 1  ;;  %p201_p3 = scmp.eq.s32.totalorder %s1043_s29, 1 }
   0xc   : > { %p1664_p4 = por %p1993_p1, %p45_p0  ;;  %p1044_p5 = scmp.ge.s32.totalorder %s1581_s27, 1 }
   0xd   : > { %p1669_p6 = por %p201_p3, %p45_p0  ;;  %p208_p7 = scmp.lt.s32.totalorder %s1581_s27, 3 }
   0xe   : > { %s2000_s30 = scalar_select %p1664_p4, 1, 0 }
   0xf   : > { %s2001_s8 = scalar_select %p1669_p6, 1, 0 }
  0x10   : > { %p1674_p8 = pnand %p1044_p5, %p208_p7  ;;  %s1583_s10 = smov [#allocation5]  }
  0x11   : > { %s220_s11 = sshll.u32 %s1583_s10, 4  ;;  %s1584_s13 = smov [#allocation7]   ;;  %s221_s11 = int_to_ptr.vmem [resolvable:$true] %s220_s11 }
  0x12   : > { %s2002_s9 = scalar_select %p1674_p8, 1, 0 }
  0x13   : > { %p1305_p9 = pneg %p1674_p8  ;;  %s236_s14 = sshll.u32 %s1584_s13, 4  ;;  %s237_s14 = int_to_ptr.vmem [resolvable:$true] %s236_s14 }
  0x14   : > { %s1585_s15 = smov [#allocation8]   ;;  %s1414_s17 = scalar_lea.vmem %s221_s11, 1024 }
  0x15   : > { %p1683_p11 = pnand %p1305_p9, %p1993_p1  ;;  %s252_s16 = sshll.u32 %s1585_s15, 4  ;;  %s253_s16 = int_to_ptr.vmem [resolvable:$true] %s252_s16 }
  0x16   : > { %p1415_p13 = scmp.ne.s32.totalorder %s221_s11, %s1414_s17  ;;  %p1422_p5 = scmp.lt.s32.totalorder %s221_s11, %s221_s11 }
  0x17   : > { %p1405_p12 = pneg %p1683_p11  ;;  %p1423_p7 = scmp.lt.s32.totalorder %s1414_s17, %s1414_s17 }
  0x19   : > { %p1417_p0 = pnand %p1415_p13, %p1405_p12  ;;  %p1424_p9 = por %p1423_p7, %p1422_p5 }
  0x1b   : > { %p1418_p3 = pneg %p1417_p0 }
  0x1d   : > { %p1425_p10 = pnand %p1424_p9, %p1418_p3 }
  0x1f   : > { %1428 = shalt.err (!%p1425_p10)
}
  0x20   : > { %s1994_s18 = smov 64   ;;  %s1995_s19 = smov 4  }
  0x21   : > { %s2004_s1 = sld [smem:[#allocation15_spill]]  ;;  %s1440_s22 = scalar_lea.vmem %s237_s14, 1024 }
  0x22   : > { %p1441_p13 = scmp.ne.s32.totalorder %s237_s14, %s1440_s22  ;;  %p1448_p3 = scmp.lt.s32.totalorder %s237_s14, %s237_s14 }
  0x23   : > { %p1449_p10 = scmp.lt.s32.totalorder %s1440_s22, %s1440_s22 }
  0x24   : > { %p1443_p0 = pnand %p1441_p13, %p1405_p12 }
  0x25   : > { %p1450_p7 = por %p1449_p10, %p1448_p3 }
  0x26   : > { %p1444_p5 = pneg %p1443_p0 }
  0x27   : > { %1308 = dma.hbm_to_vmem [thread:$0]  (!%p1683_p11), %s2004_s1, 1024, %s221_s11, [#allocation6], %s1994_s18, %s1994_s18, %s1995_s19  }
  0x28   : > { %p1451_p9 = pnand %p1450_p7, %p1444_p5 }
  0x2a   : > { %1454 = shalt.err (!%p1451_p9)
}
  0x2b   : > { %1311 = dma.hbm_to_vmem [thread:$0]  (!%p1683_p11), %s1988_s3, 1024, %s237_s14, [#allocation6], %s1994_s18, %s1994_s18, %s1995_s19  }
  0x2c   : > { %s1466_s10 = scalar_lea.vmem %s253_s16, 1024  ;;  %p1474_p3 = scmp.lt.s32.totalorder %s253_s16, %s253_s16 }
  0x2d   : > { %p1467_p1 = scmp.ne.s32.totalorder %s253_s16, %s1466_s10  ;;  %p1475_p5 = scmp.lt.s32.totalorder %s1466_s10, %s1466_s10 }
  0x2f   : > { %p1469_p13 = pnand %p1467_p1, %p1405_p12  ;;  %p1476_p10 = por %p1475_p5, %p1474_p3 }
  0x31   : > { %p1470_p0 = pneg %p1469_p13 }
  0x33   : > { %p1477_p7 = pnand %p1476_p10, %p1470_p0 }
  0x35   : > { %1480 = shalt.err (!%p1477_p7)
}
  0x36   : > { %1314 = dma.hbm_to_vmem [thread:$0]  (!%p1683_p11), %s1990_s5, 1024, %s253_s16, [#allocation9], %s1994_s18, %s1994_s18, %s1995_s19  }
  0x37   : > { %s1723_s14 = sadd.s32 1, %s1581_s27   ;;  %s32_s15 = sadd.s32 1, %s1577_s26 }
  0x38   : > { %s29_s12 = ssub.s32 %s1581_s27, %s1723_s14  ;;  %p39_p12 = scmp.ne.s32.totalorder %s1577_s26, %s1573_s25 }
  0x39   : > { %p30_p1 = scmp.eq.s32.totalorder %s29_s12, 0  ;;  %p40_p9 = scmp.eq.s32.totalorder %s1581_s27, 0 }
  0x3a   : > { %p1326_p13 = scmp.lt.s32.totalorder %s1581_s27, 2  ;;  %p1737_p3 = por %p195_p2, %p39_p12 }
  0x3b   : > { %s1733_s17 = scalar_select %p30_p1, %s1577_s26, %s32_s15  }
  0x3c   : > { %p41_p0 = por %p40_p9, %p39_p12  ;;  %s269_s21 = sand.u32 1, %s1577_s26  }
  0x3d   : > { %s2005_s20 = scalar_select %p1737_p3, 1, 0 }
  0x3e   : > { %s1091_s22 = smul.u32 832, %s1581_s27  ;;  %p1743_p11 = pnand %p1326_p13, %p41_p0 }
  0x3f   : > { %s1286_s16 = smul.u32 52, %s269_s21  ;;  %s1754_s15 = scalar_lea.sflag [#allocation3], %s269_s21 }
  0x40   : > { %s1750_s11 = scalar_lea.hbm %s1985_s0, %s1091_s22  ;;  %p1483_p5 = pneg %p1743_p11 }
  0x41   : > { %s273_s13 = scalar_lea.vmem [#allocation2], %s1286_s16  ;;  %s1481_s18 = scalar_lea.hbm %s1750_s11, 832 }
  0x42   : > { %s280_s12 = sshll.u32 %s273_s13, 4  ;;  %p1482_p2 = scmp.ne.s32.totalorder %s1750_s11, %s1481_s18  ;;  %s1752_s12 = int_to_ptr.vmem [resolvable:$true] %s280_s12 }
  0x43   : > { %s1486_s22 = scalar_lea.hbm %s1985_s0, 1664  ;;  %p1487_p1 = scmp.lt.s32.totalorder %s1750_s11, %s1985_s0 }
  0x44   : > { %p1484_p10 = pnand %p1483_p5, %p1482_p2  ;;  %p1488_p12 = scmp.lt.s32.totalorder %s1486_s22, %s1481_s18 }
  0x46   : > { %p1485_p7 = pneg %p1484_p10  ;;  %p1489_p9 = por %p1488_p12, %p1487_p1 }
  0x48   : > { %p1490_p13 = pnand %p1489_p9, %p1485_p7 }
  0x4a   : > { %1493 = shalt.err (!%p1490_p13)
}
  0x4b   : > { %s1494_s21 = scalar_lea.vmem %s1752_s12, 832  ;;  %s1588_s16 = smov [#allocation2]  }
  0x4c   : > { %p1495_p0 = scmp.ne.s32.totalorder %s1752_s12, %s1494_s21  ;;  %s1499_s13 = sshll.u32 %s1588_s16, 4  ;;  %s1500_s13 = int_to_ptr.vmem [resolvable:$false] %s1499_s13 }
  0x4d   : > { %s1501_s19 = scalar_lea.vmem %s1500_s13, 1664  ;;  %p1502_p10 = scmp.lt.s32.totalorder %s1752_s12, %s1500_s13 }
  0x4e   : > { %p1497_p6 = pnand %p1495_p0, %p1483_p5  ;;  %p1503_p3 = scmp.lt.s32.totalorder %s1501_s19, %s1494_s21 }
  0x50   : > { %p1498_p2 = pneg %p1497_p6  ;;  %p1504_p4 = por %p1503_p3, %p1502_p10 }
  0x52   : > { %p1505_p8 = pnand %p1504_p4, %p1498_p2 }
  0x54   : > { %1508 = shalt.err (!%p1505_p8)
}
  0x55   : > { %s2007_s1 = smov 4   ;;  %s2008_s18 = smov 64  }
  0x56   : > { %1318 = dma.hbm_to_vmem [thread:$0]  (!%p1743_p11), %s1750_s11, 832, %s1752_s12, %s1754_s15, %s2008_s18, %s2008_s18, %s2007_s1  }
  0x57   : > { %p2009_p6 = scmp.ne.s32.totalorder %s2002_s9, 0 }
  0x58   : > { %s1781_s29 = sand.u32 (!%p2009_p6), 1, %s1573_s25   ;;  %p2010_p4 = scmp.ne.s32.totalorder (!%p2009_p6), %s2000_s30, 0 }
  0x59   : > { %292 = sbr.rel (%p2009_p6) target bundleno = 800 (0x320), region = 48  ;;  %s295_s10 = scalar_lea.sflag (!%p2009_p6), [#allocation3], %s1781_s29 }
  0x5a   : > { %s1287_s22 = smul.u32 (!%p2009_p6), 52, %s1781_s29 }
  0x5c   : > { %s1785_s21 = scalar_lea.vmem (!%p2009_p6), [#allocation2], %s1287_s22 }
  0x5e   : > { %1552 = dma.done.wait (%p2010_p4), %s295_s10, 832  }
  0x5f   : > { %1554 = vsyncadd (%p2010_p4), %s295_s10, 4294966464  ;;  %p2011_p8 = scmp.eq.s32.totalorder %s1655_s28, 0 }
  0x61   : > { %1556 = dma.done.wait (%p2011_p8), [#allocation6], 2048   ;;  %p2012_p3 = pmov %p2011_p8 }
  0x63   : > { %1558 = vsyncadd (%p2012_p3), [#allocation6], 4294965248  ;;  %p2013_p11 = pmov %p2012_p3 }
  0x64   : > { %p2014_p5 = pmov %p2012_p3 }
  0x65   : > { %1560 = dma.done.wait (%p2013_p11), [#allocation9], 1024  }
  0x66   : > { %1562 = vsyncadd (%p2014_p5), [#allocation9], 4294966272  ;;  %v1589_v0 = vmov 0.0   ;;  %vm1590_vm0 = vmmov 0   ;;  %v1372_v1 = vld [vmem:[#allocation5 + $0x38] sm:$0xff]   ;;  %v1373_v2 = vld [vmem:[#allocation5 + $0x30] sm:$0xff]  }
  0x67   : > { %1138 = vmatprep.subr.bf16.mxu0 %v1589_v0  ;;  %1270 = vmatprep.subr.bf16.mxu1 %v1589_v0  ;;  %v1374_v3 = vld [vmem:[#allocation5 + $0x28] sm:$0xff]   ;;  %v1375_v4 = vld [vmem:[#allocation5 + $0x20] sm:$0xff]   ;;  %v1376_v5 = vld [vmem:[#allocation5 + $0x18] sm:$0xff]   ;;  %s1288_s12 = smul.u32 104, %s1781_s29  ;;  %p2015_p1 = scmp.ne.s32.totalorder %s2005_s20, 0 }
  0x68   : > { %1154 = vmatprep.mubr.msk.bf16.mxu0 %vm1590_vm0, %v1589_v0  ;;  %1170 = vmatprep.mubr.msk.bf16.mxu1 %vm1590_vm0, %v1589_v0  ;;  %v1377_v6 = vld [vmem:[#allocation5 + $0x10] sm:$0xff]   ;;  %v1378_v7 = vld [vmem:[#allocation5 + $0x8] sm:$0xff]   ;;  %v1379_v8 = vld [vmem:[#allocation5] sm:$0xff]   ;;  %s1092_s19 = smul.u32 1664, %s1655_s28  ;;  %s928_s28 = scalar_lea.sflag [#allocation4], %s1781_s29 }
  0x69   : > { %1139 = vmatpush3.bf16.msra.mxu0 %v1372_v1  ;;  %1278 = vmatpush3.bf16.msra.mxu1 %v1372_v1  ;;  %v1380_v9 = vld [vmem:[%s1785_s21] sm:$0xff]   ;;  %v1381_v13 = vld [vmem:[%s1785_s21 + $0x8] sm:$0xff]   ;;  %v1382_v17 = vld [vmem:[%s1785_s21 + $0x10] sm:$0xff]   ;;  %s1920_s13 = scalar_lea.vmem [#allocation10], %s1288_s12  ;;  %s1591_s30 = smov [#allocation10]  }
  0x6a   : > { %1140 = vmatprep.subr.bf16.mxu0 %v1589_v0  ;;  %1271 = vmatprep.subr.bf16.mxu1 %v1589_v0  ;;  %v1384_v10 = vld [vmem:[%s1785_s21 + $0x20] sm:$0xff]   ;;  %v1385_v14 = vld [vmem:[%s1785_s21 + $0x28] sm:$0xff]   ;;  %v1386_v18 = vld [vmem:[%s1785_s21 + $0x30] ss:$0 sps:$4 sm:$0xff]   ;;  %s941_s1 = sshll.u32 %s1920_s13, 4  ;;  %s1939_s10 = scalar_lea.hbm %s1992_s7, %s1092_s19  ;;  %s1941_s1 = int_to_ptr.vmem [resolvable:$true] %s941_s1 }
  0x6b   : > { %v1387_v11 = vld [vmem:[#allocation7 + $0x38] sm:$0xff]   ;;  %v1388_v12 = vld [vmem:[#allocation7 + $0x30] sm:$0xff]   ;;  %v1389_v15 = vld [vmem:[#allocation7 + $0x28] sm:$0xff]   ;;  %s1513_s9 = sshll.u32 %s1591_s30, 4  ;;  %s1514_s9 = int_to_ptr.vmem [resolvable:$false] %s1513_s9 }
  0x6c   : > { %v1390_v16 = vld [vmem:[#allocation7 + $0x20] sm:$0xff]   ;;  %v1391_v19 = vld [vmem:[#allocation7 + $0x18] sm:$0xff]   ;;  %v1392_v21 = vld [vmem:[#allocation7 + $0x10] sm:$0xff]   ;;  %s1515_s23 = scalar_lea.vmem %s1514_s9, 3328  ;;  %p1516_p13 = scmp.lt.s32.totalorder %s1941_s1, %s1514_s9 }
  0x6d   : > { %1141 = vmatpush3.bf16.msra.mxu0 %v1373_v2  ;;  %1279 = vmatpush3.bf16.msra.mxu1 %v1373_v2  ;;  %v1383_v20 = vld [vmem:[%s1785_s21 + $0x18] sm:$0xff]   ;;  %v1395_v24 = vld [vmem:[#allocation8 + $0x38] sm:$0xff]   ;;  %s1509_s21 = scalar_lea.vmem %s1941_s1, 1664 }
  0x6e   : > { %1142 = vmatprep.subr.bf16.mxu0 %v1589_v0  ;;  %1272 = vmatprep.subr.bf16.mxu1 %v1589_v0  ;;  %v1393_v22 = vld [vmem:[#allocation7 + $0x8] sm:$0xff]   ;;  %v1394_v23 = vld [vmem:[#allocation7] sm:$0xff]   ;;  %v1396_v25 = vld [vmem:[#allocation8 + $0x30] sm:$0xff]   ;;  %p1510_p7 = scmp.ne.s32.totalorder %s1941_s1, %s1509_s21  ;;  %p1517_p0 = scmp.lt.s32.totalorder %s1515_s23, %s1509_s21 }
  0x6f   : > { %v1397_v26 = vld [vmem:[#allocation8 + $0x28] sm:$0xff]   ;;  %v1398_v27 = vld [vmem:[#allocation8 + $0x20] sm:$0xff]   ;;  %v1399_v28 = vld [vmem:[#allocation8 + $0x18] sm:$0xff]  }
  0x70   : > { %v1400_v29 = vld [vmem:[#allocation8 + $0x10] sm:$0xff]   ;;  %v1858_v30 = vld [vmem:[%s1987_s2] ss:$0 sm:$0xff]  ;;  %p1511_p12 = pnand %p1510_p7, %p2015_p1  ;;  %p1518_p2 = por %p1517_p0, %p1516_p13 }
  0x71   : > { %1143 = vmatpush3.bf16.msra.mxu0 %v1374_v3  ;;  %1280 = vmatpush3.bf16.msra.mxu1 %v1374_v3 }
  0x72   : > { %1144 = vmatprep.subr.bf16.mxu0 %v1589_v0  ;;  %1273 = vmatprep.subr.bf16.mxu1 %v1589_v0  ;;  %p1512_p9 = pneg %p1511_p12 }
  0x74   : > { %p1519_p10 = pnand %p1518_p2, %p1512_p9 }
  0x75   : > { %1145 = vmatpush3.bf16.msra.mxu0 %v1375_v4  ;;  %1281 = vmatpush3.bf16.msra.mxu1 %v1375_v4 }
  0x76   : > { %1146 = vmatprep.subr.bf16.mxu0 %v1589_v0  ;;  %1274 = vmatprep.subr.bf16.mxu1 %v1589_v0 }
  0x79   : > { %1147 = vmatpush3.bf16.msra.mxu0 %v1376_v5  ;;  %1282 = vmatpush3.bf16.msra.mxu1 %v1376_v5 }
  0x7a   : > { %1148 = vmatprep.subr.bf16.mxu0 %v1589_v0  ;;  %1275 = vmatprep.subr.bf16.mxu1 %v1589_v0 }
  0x7d   : > { %1149 = vmatpush3.bf16.msra.mxu0 %v1377_v6  ;;  %1283 = vmatpush3.bf16.msra.mxu1 %v1377_v6 }
  0x7e   : > { %1150 = vmatprep.subr.bf16.mxu0 %v1589_v0  ;;  %1276 = vmatprep.subr.bf16.mxu1 %v1589_v0 }
  0x81   : > { %1151 = vmatpush3.bf16.msra.mxu0 %v1378_v7  ;;  %1284 = vmatpush3.bf16.msra.mxu1 %v1378_v7 }
  0x82   : > { %1152 = vmatprep.subr.bf16.mxu0 %v1589_v0  ;;  %1277 = vmatprep.subr.bf16.mxu1 %v1589_v0 }
  0x85   : > { %1153 = vmatpush3.bf16.msra.mxu0 %v1379_v8  ;;  %1285 = vmatpush3.bf16.msra.mxu1 %v1379_v8 }
  0x86   : > { %1182 = vmatprep.subr.bf16.mxu1 %v1589_v0  ;;  %1226 = vmatprep.subr.bf16.mxu0 %v1589_v0 }
  0x88   : > { %1155 = vmatmul.mubr.bf16.vlgmr.msra.gmra.mxu0 %v1380_v9  ;;  %1171 = vmatmul.mubr.bf16.vlgmr.msra.gmra.mxu1 %v1384_v10 }
  0x89   : > { %1158 = vmatprep.mubr.msk.bf16.mxu0 %vm1590_vm0, %v1589_v0  ;;  %1174 = vmatprep.mubr.msk.bf16.mxu1 %vm1590_vm0, %v1589_v0 }
  0x8a   : > { %1183 = vmatpush3.bf16.msra.mxu1 %v1387_v11  ;;  %1227 = vmatpush3.bf16.msra.mxu0 %v1395_v24 }
  0x8b   : > { %1184 = vmatprep.subr.bf16.mxu1 %v1589_v0  ;;  %1228 = vmatprep.subr.bf16.mxu0 %v1589_v0 }
  0x8e   : > { %1185 = vmatpush3.bf16.msra.mxu1 %v1388_v12  ;;  %1229 = vmatpush3.bf16.msra.mxu0 %v1396_v25 }
  0x8f   : > { %1186 = vmatprep.subr.bf16.mxu1 %v1589_v0  ;;  %1230 = vmatprep.subr.bf16.mxu0 %v1589_v0 }
  0x90   : > { %1159 = vmatmul.mubr.bf16.gmra.mxu0 %v1381_v13  ;;  %1175 = vmatmul.mubr.bf16.gmra.mxu1 %v1385_v14 }
  0x91   : > { %1162 = vmatprep.mubr.msk.bf16.mxu0 %vm1590_vm0, %v1589_v0  ;;  %1178 = vmatprep.mubr.msk.bf16.mxu1 %vm1590_vm0, %v1589_v0 }
  0x92   : > { %1187 = vmatpush3.bf16.msra.mxu1 %v1389_v15  ;;  %1231 = vmatpush3.bf16.msra.mxu0 %v1397_v26 }
  0x93   : > { %1188 = vmatprep.subr.bf16.mxu1 %v1589_v0  ;;  %1232 = vmatprep.subr.bf16.mxu0 %v1589_v0 }
  0x96   : > { %1189 = vmatpush3.bf16.msra.mxu1 %v1390_v16  ;;  %1233 = vmatpush3.bf16.msra.mxu0 %v1398_v27 }
  0x97   : > { %1190 = vmatprep.subr.bf16.mxu1 %v1589_v0  ;;  %1234 = vmatprep.subr.bf16.mxu0 %v1589_v0 }
  0x98   : > { %1163 = vmatmul.mubr.bf16.gmra.mxu0 %v1382_v17  ;;  %1179 = vmatmul.mubr.bf16.gmra.mxu1 %v1386_v18 }
  0x99   : > { %1166 = vmatprep.mubr.msk.bf16.mxu0 %vm1590_vm0, %v1589_v0  ;;  %1198 = vmatprep.mubr.msk.bf16.mxu1 %vm1590_vm0, %v1589_v0 }
  0x9a   : > { %1191 = vmatpush3.bf16.msra.mxu1 %v1391_v19  ;;  %1235 = vmatpush3.bf16.msra.mxu0 %v1399_v28 }
  0x9b   : > { %1192 = vmatprep.subr.bf16.mxu1 %v1589_v0  ;;  %1236 = vmatprep.subr.bf16.mxu0 %v1589_v0 }
  0x9e   : > { %1193 = vmatpush3.bf16.msra.mxu1 %v1392_v21  ;;  %1237 = vmatpush3.bf16.msra.mxu0 %v1400_v29  ;;  %v1401_v29 = vld [vmem:[#allocation8 + $0x8] sm:$0xff]  }
  0x9f   : > { %1194 = vmatprep.subr.bf16.mxu1 %v1589_v0  ;;  %1238 = vmatprep.subr.bf16.mxu0 %v1589_v0 }
  0xa0   : > { %1167 = vmatmul.mubr.bf16.gmra.mxu0 %v1383_v20 }
  0xa1   : > { %1242 = vmatprep.mubr.msk.bf16.mxu0 %vm1590_vm0, %v1589_v0 }
  0xa2   : > { %1195 = vmatpush3.bf16.msra.mxu1 %v1393_v22  ;;  %1239 = vmatpush3.bf16.msra.mxu0 %v1401_v29 }
  0xa3   : > { %1196 = vmatprep.subr.bf16.mxu1 %v1589_v0  ;;  %1240 = vmatprep.subr.bf16.mxu0 %v1589_v0 }
  0xa6   : > { %1197 = vmatpush3.bf16.msra.mxu1 %v1394_v23 }
 0x148   : > { %v502_v31 = vpop.f32.mrf.mxu0  ;;  %v534_v32 = vpop.f32.mrf.mxu1 }
 0x149   : > { %v503_v35 = vadd.f32 %v1858_v30, %v502_v31  ;;  %v535_v15 = vadd.f32 %v1858_v30, %v534_v32  ;;  %v1402_v31 = vld [vmem:[#allocation8] sm:$0xff]   ;;  %v1889_v32 = vld [vmem:[%s1989_s4] ss:$0 sm:$0xff] }
 0x14a   : > { %v1156_v33 = vpop.f32.mrf.mxu0  ;;  %v1172_v34 = vpop.f32.mrf.mxu1  ;;  %1241 = vmatpush3.bf16.msra.mxu0 %v1402_v31  ;;  %v1079_v31 = vld [vmem:[%s1991_s6] ss:$0 sm:$0xff] }
 0x14b   : > { %v556_v41 = vmax.f32 %v503_v35, 0.0  ;;  %v564_v18 = vmax.f32 %v535_v15, 0.0 }
 0x14c   : > { %v505_v36 = vpop.f32.mrf.mxu0  ;;  %v537_v37 = vpop.f32.mrf.mxu1 }
 0x14d   : > { %v506_v38 = vadd.f32 %v1858_v30, %v505_v36  ;;  %v538_v17 = vadd.f32 %v1858_v30, %v537_v37 }
 0x14e   : > { %v1157_v39 = vpop.f32.mrf.mxu0  ;;  %v1173_v40 = vpop.f32.mrf.mxu1 }
 0x14f   : > { %v557_v42 = vmax.f32 %v506_v38, 0.0  ;;  %v565_v19 = vmax.f32 %v538_v17, 0.0 }
 0x150   : > { %v510_v43 = vpop.f32.mrf.mxu0  ;;  %v542_v44 = vpop.f32.mrf.mxu1 }
 0x151   : > { %v569_v45 = vpack.c.bf16 %v557_v42, %v556_v41  ;;  %v511_v48 = vadd.f32 %v1858_v30, %v510_v43  ;;  %v573_v20 = vpack.c.bf16 %v565_v19, %v564_v18  ;;  %v543_v21 = vadd.f32 %v1858_v30, %v542_v44 }
 0x152   : > { %v1160_v46 = vpop.f32.mrf.mxu0  ;;  %v1176_v47 = vpop.f32.mrf.mxu1 }
 0x153   : > { %1199 = vmatmul.mubr.bf16.vlgmr.msra.gmra.mxu1 %v569_v45  ;;  %v558_v54 = vmax.f32 %v511_v48, 0.0  ;;  %v566_v23 = vmax.f32 %v543_v21, 0.0 }
 0x154   : > { %v513_v49 = vpop.f32.mrf.mxu0  ;;  %1202 = vmatprep.mubr.msk.bf16.mxu1 %vm1590_vm0, %v1589_v0  ;;  %v545_v50 = vpop.f32.mrf.mxu1 }
 0x155   : > { %v514_v51 = vadd.f32 %v1858_v30, %v513_v49  ;;  %v546_v22 = vadd.f32 %v1858_v30, %v545_v50 }
 0x156   : > { %v1161_v52 = vpop.f32.mrf.mxu0  ;;  %v1177_v53 = vpop.f32.mrf.mxu1 }
 0x157   : > { %v559_v55 = vmax.f32 %v514_v51, 0.0  ;;  %v567_v24 = vmax.f32 %v546_v22, 0.0 }
 0x158   : > { %v518_v56 = vpop.f32.mrf.mxu0  ;;  %v550_v57 = vpop.f32.mrf.mxu1 }
 0x159   : > { %v570_v58 = vpack.c.bf16 %v559_v55, %v558_v54  ;;  %v519_v61 = vadd.f32 %v1858_v30, %v518_v56  ;;  %v551_v25 = vadd.f32 %v1858_v30, %v550_v57  ;;  %v574_v26 = vpack.c.bf16 %v567_v24, %v566_v23 }
 0x15a   : > { %v1164_v59 = vpop.f32.mrf.mxu0  ;;  %v1180_v60 = vpop.f32.mrf.mxu1 }
 0x15b   : > { %1203 = vmatmul.mubr.bf16.gmra.mxu1 %v570_v58  ;;  %v560_v4 = vmax.f32 %v519_v61, 0.0  ;;  %v568_v27 = vmax.f32 %v551_v25, 0.0 }
 0x15c   : > { %v521_v62 = vpop.f32.mrf.mxu0  ;;  %1206 = vmatprep.mubr.msk.bf16.mxu1 %vm1590_vm0, %v1589_v0  ;;  %v553_v63 = vpop.f32.mrf.mxu1 }
 0x15d   : > { %v522_v1 = vadd.f32 %v1858_v30, %v521_v62  ;;  %v575_v28 = vpack.c.bf16 %v568_v27, %v568_v27 }
 0x15e   : > { %v1165_v2 = vpop.f32.mrf.mxu0  ;;  %v1181_v3 = vpop.f32.mrf.mxu1 }
 0x15f   : > { %v561_v5 = vmax.f32 %v522_v1, 0.0 }
 0x160   : > { %v526_v6 = vpop.f32.mrf.mxu0 }
 0x161   : > { %v571_v7 = vpack.c.bf16 %v561_v5, %v560_v4  ;;  %v527_v9 = vadd.f32 %v1858_v30, %v526_v6 }
 0x162   : > { %v1168_v8 = vpop.f32.mrf.mxu0 }
 0x163   : > { %1207 = vmatmul.mubr.bf16.gmra.mxu1 %v571_v7  ;;  %v562_v13 = vmax.f32 %v527_v9, 0.0 }
 0x164   : > { %v529_v10 = vpop.f32.mrf.mxu0  ;;  %1210 = vmatprep.mubr.msk.bf16.mxu1 %vm1590_vm0, %v1589_v0 }
 0x165   : > { %v530_v11 = vadd.f32 %v1858_v30, %v529_v10 }
 0x166   : > { %v1169_v12 = vpop.f32.mrf.mxu0 }
 0x167   : > { %v563_v14 = vmax.f32 %v530_v11, 0.0 }
 0x169   : > { %v572_v16 = vpack.c.bf16 %v563_v14, %v562_v13 }
 0x16b   : > { %1211 = vmatmul.mubr.bf16.gmra.mxu1 %v572_v16 }
 0x16c   : > { %1214 = vmatprep.mubr.msk.bf16.mxu1 %vm1590_vm0, %v1589_v0 }
 0x173   : > { %1215 = vmatmul.mubr.bf16.gmra.mxu1 %v573_v20 }
 0x174   : > { %1218 = vmatprep.mubr.msk.bf16.mxu1 %vm1590_vm0, %v1589_v0 }
 0x17b   : > { %1219 = vmatmul.mubr.bf16.gmra.mxu1 %v574_v26 }
 0x17c   : > { %1222 = vmatprep.mubr.msk.bf16.mxu1 %vm1590_vm0, %v1589_v0 }
 0x183   : > { %1223 = vmatmul.mubr.bf16.gmra.mxu1 %v575_v28 }
 0x213   : > { %v681_v30 = vpop.f32.mrf.mxu1 }
 0x214   : > { %v682_v34 = vadd.f32 %v1889_v32, %v681_v30 }
 0x215   : > { %v1200_v33 = vpop.f32.mrf.mxu1 }
 0x216   : > { %v735_v38 = vmax.f32 %v682_v34, 0.0 }
 0x217   : > { %v684_v35 = vpop.f32.mrf.mxu1 }
 0x218   : > { %v685_v36 = vadd.f32 %v1889_v32, %v684_v35 }
 0x219   : > { %v1201_v37 = vpop.f32.mrf.mxu1 }
 0x21a   : > { %v736_v39 = vmax.f32 %v685_v36, 0.0 }
 0x21b   : > { %v689_v40 = vpop.f32.mrf.mxu1 }
 0x21c   : > { %v748_v41 = vpack.c.bf16 %v736_v39, %v735_v38  ;;  %v690_v43 = vadd.f32 %v1889_v32, %v689_v40 }
 0x21d   : > { %v1204_v42 = vpop.f32.mrf.mxu1 }
 0x21e   : > { %1243 = vmatmul.mubr.bf16.vlgmr.msra.gmra.mxu0 %v748_v41  ;;  %v737_v47 = vmax.f32 %v690_v43, 0.0 }
 0x21f   : > { %v692_v44 = vpop.f32.mrf.mxu1  ;;  %1246 = vmatprep.mubr.msk.bf16.mxu0 %vm1590_vm0, %v1589_v0 }
 0x220   : > { %v693_v45 = vadd.f32 %v1889_v32, %v692_v44 }
 0x221   : > { %v1205_v46 = vpop.f32.mrf.mxu1 }
 0x222   : > { %v738_v48 = vmax.f32 %v693_v45, 0.0 }
 0x223   : > { %v697_v49 = vpop.f32.mrf.mxu1 }
 0x224   : > { %v749_v50 = vpack.c.bf16 %v738_v48, %v737_v47  ;;  %v698_v52 = vadd.f32 %v1889_v32, %v697_v49 }
 0x225   : > { %v1208_v51 = vpop.f32.mrf.mxu1 }
 0x226   : > { %1247 = vmatmul.mubr.bf16.gmra.mxu0 %v749_v50  ;;  %v739_v56 = vmax.f32 %v698_v52, 0.0 }
 0x227   : > { %v700_v53 = vpop.f32.mrf.mxu1  ;;  %1250 = vmatprep.mubr.msk.bf16.mxu0 %vm1590_vm0, %v1589_v0 }
 0x228   : > { %v701_v54 = vadd.f32 %v1889_v32, %v700_v53 }
 0x229   : > { %v1209_v55 = vpop.f32.mrf.mxu1 }
 0x22a   : > { %v740_v57 = vmax.f32 %v701_v54, 0.0 }
 0x22b   : > { %v705_v58 = vpop.f32.mrf.mxu1 }
 0x22c   : > { %v750_v59 = vpack.c.bf16 %v740_v57, %v739_v56  ;;  %v706_v61 = vadd.f32 %v1889_v32, %v705_v58 }
 0x22d   : > { %v1212_v60 = vpop.f32.mrf.mxu1 }
 0x22e   : > { %1251 = vmatmul.mubr.bf16.gmra.mxu0 %v750_v59  ;;  %v741_v2 = vmax.f32 %v706_v61, 0.0 }
 0x22f   : > { %v708_v62 = vpop.f32.mrf.mxu1  ;;  %1254 = vmatprep.mubr.msk.bf16.mxu0 %vm1590_vm0, %v1589_v0 }
 0x230   : > { %v709_v63 = vadd.f32 %v1889_v32, %v708_v62 }
 0x231   : > { %v1213_v1 = vpop.f32.mrf.mxu1 }
 0x232   : > { %v742_v3 = vmax.f32 %v709_v63, 0.0 }
 0x233   : > { %v713_v4 = vpop.f32.mrf.mxu1 }
 0x234   : > { %v751_v5 = vpack.c.bf16 %v742_v3, %v741_v2  ;;  %v714_v7 = vadd.f32 %v1889_v32, %v713_v4 }
 0x235   : > { %v1216_v6 = vpop.f32.mrf.mxu1 }
 0x236   : > { %1255 = vmatmul.mubr.bf16.gmra.mxu0 %v751_v5  ;;  %v743_v11 = vmax.f32 %v714_v7, 0.0 }
 0x237   : > { %v716_v8 = vpop.f32.mrf.mxu1  ;;  %1258 = vmatprep.mubr.msk.bf16.mxu0 %vm1590_vm0, %v1589_v0 }
 0x238   : > { %v717_v9 = vadd.f32 %v1889_v32, %v716_v8 }
 0x239   : > { %v1217_v10 = vpop.f32.mrf.mxu1 }
 0x23a   : > { %v744_v12 = vmax.f32 %v717_v9, 0.0 }
 0x23b   : > { %v721_v13 = vpop.f32.mrf.mxu1 }
 0x23c   : > { %v752_v14 = vpack.c.bf16 %v744_v12, %v743_v11  ;;  %v722_v16 = vadd.f32 %v1889_v32, %v721_v13 }
 0x23d   : > { %v1220_v15 = vpop.f32.mrf.mxu1 }
 0x23e   : > { %1259 = vmatmul.mubr.bf16.gmra.mxu0 %v752_v14  ;;  %v745_v20 = vmax.f32 %v722_v16, 0.0 }
 0x23f   : > { %v724_v17 = vpop.f32.mrf.mxu1  ;;  %1262 = vmatprep.mubr.msk.bf16.mxu0 %vm1590_vm0, %v1589_v0 }
 0x240   : > { %v725_v18 = vadd.f32 %v1889_v32, %v724_v17 }
 0x241   : > { %v1221_v19 = vpop.f32.mrf.mxu1 }
 0x242   : > { %v746_v21 = vmax.f32 %v725_v18, 0.0 }
 0x243   : > { %v729_v22 = vpop.f32.mrf.mxu1 }
 0x244   : > { %v753_v23 = vpack.c.bf16 %v746_v21, %v745_v20  ;;  %v730_v24 = vadd.f32 %v1889_v32, %v729_v22 }
 0x245   : > { %v1224_v25 = vpop.f32.mrf.mxu1 }
 0x246   : > { %v747_v26 = vmax.f32 %v730_v24, 0.0  ;;  %1263 = vmatmul.mubr.bf16.gmra.mxu0 %v753_v23 }
 0x247   : > { %v732_v27 = vpop.f32.mrf.mxu1  ;;  %1266 = vmatprep.mubr.msk.bf16.mxu0 %vm1590_vm0, %v1589_v0 }
 0x248   : > { %v754_v29 = vpack.c.bf16 %v747_v26, %v747_v26 }
 0x249   : > { %v1225_v28 = vpop.f32.mrf.mxu1 }
 0x24e   : > { %1267 = vmatmul.mubr.bf16.gmra.mxu0 %v754_v29 }
 0x2de   : > { %v860_v30 = vpop.f32.mrf.mxu0 }
 0x2df   : > { %v861_v33 = vadd.f32 %v1079_v31, %v860_v30 }
 0x2e0   : > { %v1244_v34 = vpop.f32.mrf.mxu0 }
 0x2e1   : > { %914 = vst [vmem:[%s1920_s13] sm:$0xff] %v861_v33 }
 0x2e2   : > { %v863_v0 = vpop.f32.mrf.mxu0 }
 0x2e3   : > { %v864_v32 = vadd.f32 %v1079_v31, %v863_v0 }
 0x2e4   : > { %v1245_v35 = vpop.f32.mrf.mxu0 }
 0x2e5   : > { %915 = vst [vmem:[%s1920_s13 + $0x8] sm:$0xff] %v864_v32 }
 0x2e6   : > { %v868_v36 = vpop.f32.mrf.mxu0 }
 0x2e7   : > { %v869_v37 = vadd.f32 %v1079_v31, %v868_v36 }
 0x2e8   : > { %v1248_v38 = vpop.f32.mrf.mxu0 }
 0x2e9   : > { %916 = vst [vmem:[%s1920_s13 + $0x10] sm:$0xff] %v869_v37 }
 0x2ea   : > { %v871_v39 = vpop.f32.mrf.mxu0 }
 0x2eb   : > { %v872_v40 = vadd.f32 %v1079_v31, %v871_v39 }
 0x2ec   : > { %v1249_v41 = vpop.f32.mrf.mxu0 }
 0x2ed   : > { %917 = vst [vmem:[%s1920_s13 + $0x18] sm:$0xff] %v872_v40 }
 0x2ee   : > { %v876_v42 = vpop.f32.mrf.mxu0 }
 0x2ef   : > { %v877_v43 = vadd.f32 %v1079_v31, %v876_v42 }
 0x2f0   : > { %v1252_v44 = vpop.f32.mrf.mxu0 }
 0x2f1   : > { %918 = vst [vmem:[%s1920_s13 + $0x20] sm:$0xff] %v877_v43 }
 0x2f2   : > { %v879_v45 = vpop.f32.mrf.mxu0 }
 0x2f3   : > { %v880_v46 = vadd.f32 %v1079_v31, %v879_v45 }
 0x2f4   : > { %v1253_v47 = vpop.f32.mrf.mxu0 }
 0x2f5   : > { %919 = vst [vmem:[%s1920_s13 + $0x28] sm:$0xff] %v880_v46 }
 0x2f6   : > { %v884_v48 = vpop.f32.mrf.mxu0 }
 0x2f7   : > { %v885_v49 = vadd.f32 %v1079_v31, %v884_v48 }
 0x2f8   : > { %v1256_v50 = vpop.f32.mrf.mxu0 }
 0x2f9   : > { %920 = vst [vmem:[%s1920_s13 + $0x30] sm:$0xff] %v885_v49 }
 0x2fa   : > { %v887_v51 = vpop.f32.mrf.mxu0 }
 0x2fb   : > { %v888_v52 = vadd.f32 %v1079_v31, %v887_v51 }
 0x2fc   : > { %v1257_v53 = vpop.f32.mrf.mxu0 }
 0x2fd   : > { %921 = vst [vmem:[%s1920_s13 + $0x38] sm:$0xff] %v888_v52 }
 0x2fe   : > { %v892_v54 = vpop.f32.mrf.mxu0 }
 0x2ff   : > { %v893_v55 = vadd.f32 %v1079_v31, %v892_v54 }
 0x300   : > { %v1260_v56 = vpop.f32.mrf.mxu0 }
 0x301   : > { %922 = vst [vmem:[%s1920_s13 + $0x40] sm:$0xff] %v893_v55 }
 0x302   : > { %v895_v57 = vpop.f32.mrf.mxu0 }
 0x303   : > { %v896_v58 = vadd.f32 %v1079_v31, %v895_v57 }
 0x304   : > { %v1261_v59 = vpop.f32.mrf.mxu0 }
 0x305   : > { %923 = vst [vmem:[%s1920_s13 + $0x48] sm:$0xff] %v896_v58 }
 0x306   : > { %v900_v60 = vpop.f32.mrf.mxu0 }
 0x307   : > { %v901_v61 = vadd.f32 %v1079_v31, %v900_v60 }
 0x308   : > { %v1264_v62 = vpop.f32.mrf.mxu0 }
 0x309   : > { %924 = vst [vmem:[%s1920_s13 + $0x50] sm:$0xff] %v901_v61 }
 0x30a   : > { %v903_v63 = vpop.f32.mrf.mxu0 }
 0x30b   : > { %v904_v1 = vadd.f32 %v1079_v31, %v903_v63 }
 0x30c   : > { %v1265_v2 = vpop.f32.mrf.mxu0 }
 0x30d   : > { %925 = vst [vmem:[%s1920_s13 + $0x58] sm:$0xff] %v904_v1 }
 0x30e   : > { %v908_v3 = vpop.f32.mrf.mxu0 }
 0x30f   : > { %v909_v4 = vadd.f32 %v1079_v31, %v908_v3 }
 0x310   : > { %v1268_v5 = vpop.f32.mrf.mxu0 }
 0x311   : > { %926 = vst [vmem:[%s1920_s13 + $0x60] sm:$0xff] %v909_v4 }
 0x312   : > { %v911_v6 = vpop.f32.mrf.mxu0 }
 0x313   : > { %1522 = shalt.err (!%p1519_p10)
}
 0x314   : > { %s1523_s11 = scalar_lea.hbm %s1939_s10, 1664  ;;  %s1527_s16 = scalar_lea.hbm %s1992_s7, 3328 }
 0x315   : > { %p1524_p6 = scmp.ne.s32.totalorder %s1939_s10, %s1523_s11  ;;  %p1528_p3 = scmp.lt.s32.totalorder %s1939_s10, %s1992_s7 }
 0x316   : > { %p1529_p11 = scmp.lt.s32.totalorder %s1527_s16, %s1523_s11 }
 0x317   : > { %p1525_p4 = pnand %p1524_p6, %p2015_p1 }
 0x318   : > { %p1530_p5 = por %p1529_p11, %p1528_p3 }
 0x319   : > { %p1526_p8 = pneg %p1525_p4 }
 0x31b   : > { %p1531_p7 = pnand %p1530_p5, %p1526_p8 }
 0x31d   : > { %1534 = shalt.err (!%p1531_p7)
}
 0x31e   : > { %s1592_s18 = smov 128   ;;  %s1593_s22 = smov 8   ;;  %v1269_v7 = vpop.f32.mrf.mxu0 }
 0x31f   : > { %1303 = dma.vmem_to_hbm [thread:$0]  (%p2015_p1), %s1941_s1, 1664, %s1939_s10, %s928_s28, %s1592_s18, %s1592_s18, %s1593_s22  }
 0x320 PF: > { %s956_s21 = sand.u32 1, %s1569_s24   ;;  %p2016_p12 = scmp.ne.s32.totalorder %s2001_s8, 0 }
 0x321   : > { %p2017_p9 = scmp.ge.s32.totalorder %s1581_s27, 2  ;;  %s957_s30 = scalar_lea.sflag [#allocation4], %s956_s21 }
 0x323   : > { %p1320_p13 = pnand %p2017_p9, %p2016_p12 }
 0x325   : > { %p1321_p0 = pneg %p1320_p13 }
 0x327   : > { %1564 = dma.done.wait (%p1321_p0), %s957_s30, 1664  }
 0x328   : > { %1566 = vsyncadd (%p1321_p0), %s957_s30, 4294965632  ;;  %p22_p2 = scmp.ge.s32.totalorder %s1723_s14, 4   ;;  %s2018_s24 = smov %s1573_s25 }
 0x329   : > { %s2019_s25 = smov %s1577_s26  ;;  %s2020_s26 = smov %s1733_s17 }
 0x32a   : > { %s2021_s27 = smov %s1723_s14  ;;  %24 = sbr.rel (!%p22_p2) target bundleno = 9 (0x9), region = 105 }
 0x32f   :  { %962 = vsyncpa [#allocation3], 1 }
 0x330   :  { %964 = vsyncpa [#allocation3 + $0x1], 1 }
 0x331   :  { %965 = vsyncpa [#allocation6], 1 }
 0x332   :  { %966 = vsyncpa [#allocation9], 1 }
 0x333   :  { %967 = vsyncpa [#allocation4], 1 }
 0x334   :  { %969 = vsyncpa [#allocation4 + $0x1], 1 }

</bundles_post_ra>
